<compile_context>
chip_gen: v7x
topology: tpu7x:2x2x1
jax: 0.10.0
libtpu: 0.0.40
codegen_flags: <defaults>
</compile_context>

<pallas_src>
import functools

import jax
import jax.numpy as jnp
from jax.experimental import pallas as pl
from jax.experimental.pallas import tpu as pltpu


# ---------------------------------------------------------------------------
# Fused kernel: BN(eval) + ReLU + 3x3x3 conv (stride 1, pad 1, no bias)
# + channel-concat, for NB batch samples per grid step.
# Row layout: row r = d*NB + b (depth-major); lane layout: flattened (C,H,W).
# ---------------------------------------------------------------------------
def _fused_bn_relu_conv_cat_kernel(x_ref, scale_ref, shift_ref, w_ref, o_ref,
                                   pad_ref, *, NB, D, CHW_IN):
    """
    x_ref     : (1, D*NB, Cin*H*W)                 raw activations
    scale_ref : (1, Cin*H*W)                        folded BN scale (channel-major tiled)
    shift_ref : (1, Cin*H*W)                        folded BN shift
    w_ref     : (3, Cin*H*W, Cout*H*W)  bf16        banded conv-as-matmul weight per kd tap
    o_ref     : (1, D*NB, Cin*H*W + Cout*H*W)       [x passthrough | conv output]
    pad_ref   : ((D+2)*NB, Cin*H*W)     f32 VMEM    D-zero-padded BN+ReLU activations
    """
    M = NB * D

    # Re-zero the two D-halo row groups EVERY grid step (scratch persists
    # across steps and is per-core; do NOT gate this on program_id == 0).
    zeros = jnp.zeros((NB, CHW_IN), pad_ref.dtype)
    pad_ref[0:NB, :] = zeros
    pad_ref[NB + M:2 * NB + M, :] = zeros

    # Fused eval-mode BN (folded affine) + ReLU -- lane-dense f32 VPU work.
    x = x_ref[0]                                         # (D*NB, Cin*H*W)
    a = jnp.maximum(x * scale_ref[...] + shift_ref[...], 0.0)
    pad_ref[NB:NB + M, :] = a.astype(pad_ref.dtype)

    # 3 MXU matmuls (one per kd tap): M = D*NB, K = Cin*H*W, N = Cout*H*W.
    # Depth-major packing makes every tap a single contiguous row window
    # (offset kd*NB rows), so there are no per-sample garbage rows to discard.
    # Operands are cast to bf16 at the dot boundary only; accumulate in f32.
    acc = jnp.dot(pad_ref[0:M, :].astype(jnp.bfloat16), w_ref[0],
                  preferred_element_type=jnp.float32)
    acc = acc + jnp.dot(pad_ref[NB:NB + M, :].astype(jnp.bfloat16), w_ref[1],
                        preferred_element_type=jnp.float32)
    acc = acc + jnp.dot(pad_ref[2 * NB:2 * NB + M, :].astype(jnp.bfloat16),
                        w_ref[2], preferred_element_type=jnp.float32)

    # Fused concat: raw-x passthrough at lanes [0, Cin*H*W), conv output at
    # lanes [Cin*H*W, Cin*H*W + Cout*H*W).  Offsets/widths are multiples of
    # 128 at these sizes -> unmasked stores.
    o_ref[0, :, 0:CHW_IN] = x.astype(o_ref.dtype)
    o_ref[0, :, CHW_IN:] = acc.astype(o_ref.dtype)


def _fused_block_call(x_rows, scale_row, shift_row, w_band, *,
                      NB, D, CHW_IN, CHW_OUT):
    T = x_rows.shape[0]
    M = NB * D
    kernel = functools.partial(_fused_bn_relu_conv_cat_kernel,
                               NB=NB, D=D, CHW_IN=CHW_IN)
    # NOTE: constant operands (scale/shift/w_band) could be single-buffered
    # via pipeline_mode=pl.Buffered(1), and vmem_limit_bytes raised, once the
    # block is scaled up; at these sizes total VMEM use is ~3 MiB.
    return pl.pallas_call(
        kernel,
        out_shape=jax.ShapeDtypeStruct((T, M, CHW_IN + CHW_OUT), x_rows.dtype),
        grid=(T,),
        in_specs=[
            pl.BlockSpec((1, M, CHW_IN), lambda t: (t, 0, 0)),
            pl.BlockSpec((1, CHW_IN), lambda t: (0, 0)),
            pl.BlockSpec((1, CHW_IN), lambda t: (0, 0)),
            pl.BlockSpec((3, CHW_IN, CHW_OUT), lambda t: (0, 0, 0)),
        ],
        out_specs=pl.BlockSpec((1, M, CHW_IN + CHW_OUT), lambda t: (t, 0, 0)),
        scratch_shapes=[pltpu.VMEM(((D + 2) * NB, CHW_IN), jnp.float32)],
        compiler_params=pltpu.CompilerParams(
            dimension_semantics=("parallel",)),
    )(x_rows, scale_row, shift_row, w_band)


# ---------------------------------------------------------------------------
# Call-invariant parameter preparation (hoisted out of the per-forward path).
# ---------------------------------------------------------------------------
def _banded_conv_weight(conv_w, H, W):
    """(Cout, Cin, 3, 3, 3) -> (3, Cin*H*W, Cout*H*W), channel-major rows/cols.

    w_band[kd, ci*H*W + ih*W + iw, co*H*W + oh*W + ow]
        = conv_w[co, ci, kd, ih-oh+1, iw-ow+1]   if both offsets in [0,3)
        = 0                                      otherwise
    so the H/W zero-padding of the activation is implied by the band
    structure; only D padding is handled in-kernel.

    TODO(synk): this grows as (H*W)^2 and will exceed v7x's 64 MiB VMEM at
    realistic sizes (e.g. H=W=16, Cin=16, Cout=32); restructure to a W-only
    band (9 taps of (W*Cin, W*Cout)) or tile H/W before scaling up.
    """
    Cout, Cin = conv_w.shape[0], conv_w.shape[1]
    wt = jnp.transpose(conv_w, (2, 3, 4, 1, 0))          # (kd, kh, kw, ci, co)
    sh = jnp.stack([jnp.eye(H, k=1 - kh, dtype=conv_w.dtype) for kh in range(3)])
    sw = jnp.stack([jnp.eye(W, k=1 - kw, dtype=conv_w.dtype) for kw in range(3)])
    # sh[kh, ih, oh], sw[kw, iw, ow], wt[kd, kh, kw, ci, co]
    full = jnp.einsum('xio,yjp,dxyab->daijbop', sh, sw, wt)
    return full.reshape(3, Cin * H * W, Cout * H * W)


def fold_block_params(gamma, beta, running_mean, running_var, conv_w,
                      eps=1e-5, *, H, W, matmul_dtype=jnp.bfloat16):
    """Precompute folded BN affine (channel-major tiled) and banded conv weight.

    Call once when weights are loaded/updated; reuse across forwards.
    """
    Cin = conv_w.shape[1]
    scale = (gamma / jnp.sqrt(running_var + eps)).astype(jnp.float32)
    shift = (beta - running_mean * scale).astype(jnp.float32)
    # Lane layout is the flattened (C, H, W) slab -> repeat per channel.
    scale_row = jnp.repeat(scale, H * W).reshape(1, Cin * H * W)
    shift_row = jnp.repeat(shift, H * W).reshape(1, Cin * H * W)
    w_band = _banded_conv_weight(conv_w, H, W).astype(matmul_dtype)
    return scale_row, shift_row, w_band


def _pick_nb(N, D, rows_target):
    """Largest NB dividing N with NB*D <= rows_target (>= 1)."""
    nb_max = max(1, rows_target // max(D, 1))
    nb = 1
    for cand in range(1, min(N, nb_max) + 1):
        if N % cand == 0:
            nb = cand
    return nb


# ---------------------------------------------------------------------------
# Module forward:  out = cat([x, conv(relu(bn(x)))], dim=1)   (NCDHW)
# ---------------------------------------------------------------------------
def classification_basic_block_apply(x_ncdhw, scale_row, shift_row, w_band,
                                     *, nb_rows_target=128):
    N, Cin, D, H, W = x_ncdhw.shape
    CHW_IN = Cin * H * W
    CHW_OUT = w_band.shape[2]
    Cout = CHW_OUT // (H * W)

    NB = _pick_nb(N, D, nb_rows_target)
    T = N // NB

    # NCDHW -> (T, D*NB, Cin*H*W): rows (depth, sample)-major, lanes = (C,H,W)
    # slab.  Single boundary transpose; the concat needs no extra pass.
    x_rows = (x_ncdhw.reshape(T, NB, Cin, D, H, W)
              .transpose(0, 3, 1, 2, 4, 5)
              .reshape(T, D * NB, CHW_IN))

    out_rows = _fused_block_call(x_rows, scale_row, shift_row, w_band,
                                 NB=NB, D=D, CHW_IN=CHW_IN, CHW_OUT=CHW_OUT)

    # (T, D*NB, (Cin+Cout)*H*W) -> NCDHW.  Lanes [0:Cin*H*W] hold x and lanes
    # [Cin*H*W:] hold the conv output, both channel-major, so a plain reshape
    # recovers (Cin+Cout, H, W) in torch.cat([x, out], 1) order -- the concat
    # is already done inside the kernel.
    out = (out_rows.reshape(T, D, NB, Cin + Cout, H, W)
           .transpose(0, 2, 3, 1, 4, 5)
           .reshape(N, Cin + Cout, D, H, W))
    return out


def classification_basic_block(x_ncdhw, gamma, beta, running_mean, running_var,
                               conv_w, eps=1e-5, drop_rate=0.0,
                               *, nb_rows_target=128):
    """Convenience one-shot forward (folds params every call).

    For repeated inference, call fold_block_params() once and reuse
    classification_basic_block_apply().
    """
    # TODO(synk): F.dropout path (dropRate > 0 while training) not implemented.
    # TODO(synk): training-mode BatchNorm (batch statistics) not implemented.
    del drop_rate
    H, W = x_ncdhw.shape[3], x_ncdhw.shape[4]
    scale_row, shift_row, w_band = fold_block_params(
        gamma, beta, running_mean, running_var, conv_w, eps, H=H, W=W)
    return classification_basic_block_apply(
        x_ncdhw, scale_row, shift_row, w_band, nb_rows_target=nb_rows_target)


# ---------------------------------------------------------------------------
# Pure-JAX reference for correctness check.
# ---------------------------------------------------------------------------
def _reference(x, gamma, beta, mean, var, conv_w, eps=1e-5):
    scale = gamma / jnp.sqrt(var + eps)
    shift = beta - mean * scale
    act = jnp.maximum(
        x * scale[None, :, None, None, None] + shift[None, :, None, None, None],
        0.0)
    out = jax.lax.conv_general_dilated(
        act, conv_w, window_strides=(1, 1, 1),
        padding=((1, 1), (1, 1), (1, 1)),
        dimension_numbers=("NCDHW", "OIDHW", "NCDHW"))
    return jnp.concatenate([x, out], axis=1)


if __name__ == "__main__":
    key = jax.random.PRNGKey(0)
    k_x, k_g, k_b, k_m, k_v, k_w = jax.random.split(key, 6)

    N, Cin, Cout, D, H, W = 16, 4, 8, 8, 8, 8

    x = jax.random.normal(k_x, (N, Cin, D, H, W), jnp.float32)

    gamma = 1.0 + 0.1 * jax.random.normal(k_g, (Cin,), jnp.float32)
    beta = 0.1 * jax.random.normal(k_b, (Cin,), jnp.float32)
    running_mean = 0.1 * jax.random.normal(k_m, (Cin,), jnp.float32)
    running_var = 1.0 + 0.1 * jax.random.uniform(k_v, (Cin,), jnp.float32)

    # Conv3d weight, kaiming-ish scale, bias=False.
    fan_in = Cin * 27
    conv_w = jax.random.normal(k_w, (Cout, Cin, 3, 3, 3),
                               jnp.float32) / jnp.sqrt(fan_in)

    # Hoisted, call-invariant weight prep (not rebuilt per forward).
    scale_row, shift_row, w_band = fold_block_params(
        gamma, beta, running_mean, running_var, conv_w, H=H, W=W)

    fwd = jax.jit(functools.partial(classification_basic_block_apply,
                                    nb_rows_target=128))
    out = jax.block_until_ready(fwd(x, scale_row, shift_row, w_band))

    assert out.shape == (N, Cin + Cout, D, H, W), out.shape

    ref = jax.block_until_ready(
        _reference(x, gamma, beta, running_mean, running_var, conv_w))

    # Passthrough channels must be bit-exact; conv channels use bf16 matmul
    # operands with f32 accumulation -> loosened tolerance.
    assert bool(jnp.array_equal(out[:, :Cin], x))
    max_err = float(jnp.max(jnp.abs(out - ref)))
    assert max_err < 2e-2, max_err

    print("KERNEL_OK")
</pallas_src>

<mosaic_0001>
module attributes {stable_mosaic.version = 11 : i64} {
  func.func @_fused_bn_relu_conv_cat_kernel(%arg0: i32, %arg1: memref<1x128x256xf32, #tpu.memory_space<vmem>>, %arg2: memref<1x256xf32, #tpu.memory_space<vmem>>, %arg3: memref<1x256xf32, #tpu.memory_space<vmem>>, %arg4: memref<3x256x512xbf16, #tpu.memory_space<vmem>>, %arg5: memref<1x128x768xf32, #tpu.memory_space<vmem>>, %arg6: memref<160x256xf32, #tpu.memory_space<vmem>>) attributes {dimension_semantics = [#tpu.dimension_semantics<parallel>], iteration_bounds = array<i64: 1>, scalar_prefetch = 0 : i64, scratch_operands = 1 : i64, tpu.core_type = #tpu.core_type<tc>, window_params = [{transform_indices = @transform_0, window_bounds = array<i64: 1, 128, 256>}, {pipeline_mode = #tpu.pipeline_mode<synchronous>, transform_indices = @transform_1, window_bounds = array<i64: 1, 256>}, {pipeline_mode = #tpu.pipeline_mode<synchronous>, transform_indices = @transform_2, window_bounds = array<i64: 1, 256>}, {pipeline_mode = #tpu.pipeline_mode<synchronous>, transform_indices = @transform_3, window_bounds = array<i64: 3, 256, 512>}, {transform_indices = @transform_4, window_bounds = array<i64: 1, 128, 768>}]} {
    %cst = arith.constant 0.000000e+00 : f32
    %0 = vector.broadcast %cst : f32 to vector<16x256xf32>
    %c0 = arith.constant 0 : index
    %c0_0 = arith.constant 0 : index
    %1 = vector.load %arg6[%c0, %c0_0] : memref<160x256xf32, #tpu.memory_space<vmem>>, vector<16x256xf32>
    tpu.vector_store %arg6[%c0, %c0_0], %0 {strides = array<i32>} : memref<160x256xf32, #tpu.memory_space<vmem>>, vector<16x256xf32>,
    %c144 = arith.constant 144 : index
    %c0_1 = arith.constant 0 : index
    %2 = vector.load %arg6[%c144, %c0_1] : memref<160x256xf32, #tpu.memory_space<vmem>>, vector<16x256xf32>
    tpu.vector_store %arg6[%c144, %c0_1], %0 {strides = array<i32>} : memref<160x256xf32, #tpu.memory_space<vmem>>, vector<16x256xf32>,
    %c0_2 = arith.constant 0 : index
    %c0_3 = arith.constant 0 : index
    %c0_4 = arith.constant 0 : index
    %3 = vector.load %arg1[%c0_2, %c0_3, %c0_4] : memref<1x128x256xf32, #tpu.memory_space<vmem>>, vector<1x128x256xf32>
    %4 = vector.shape_cast %3 : vector<1x128x256xf32> to vector<128x256xf32>
    %c0_5 = arith.constant 0 : index
    %c0_6 = arith.constant 0 : index
    %5 = vector.load %arg2[%c0_5, %c0_6] : memref<1x256xf32, #tpu.memory_space<vmem>>, vector<1x256xf32>
    %6 = vector.broadcast %5 : vector<1x256xf32> to vector<128x256xf32>
    %7 = arith.mulf %4, %6 : vector<128x256xf32>
    %c0_7 = arith.constant 0 : index
    %c0_8 = arith.constant 0 : index
    %8 = vector.load %arg3[%c0_7, %c0_8] : memref<1x256xf32, #tpu.memory_space<vmem>>, vector<1x256xf32>
    %9 = vector.broadcast %8 : vector<1x256xf32> to vector<128x256xf32>
    %10 = arith.addf %7, %9 : vector<128x256xf32>
    %cst_9 = arith.constant 0.000000e+00 : f32
    %11 = vector.broadcast %cst_9 : f32 to vector<128x256xf32>
    %12 = arith.maximumf %10, %11 : vector<128x256xf32>
    %c16 = arith.constant 16 : index
    %c0_10 = arith.constant 0 : index
    %13 = vector.load %arg6[%c16, %c0_10] : memref<160x256xf32, #tpu.memory_space<vmem>>, vector<128x256xf32>
    tpu.vector_store %arg6[%c16, %c0_10], %12 {strides = array<i32>} : memref<160x256xf32, #tpu.memory_space<vmem>>, vector<128x256xf32>,
    %c0_11 = arith.constant 0 : index
    %c0_12 = arith.constant 0 : index
    %14 = vector.load %arg6[%c0_11, %c0_12] : memref<160x256xf32, #tpu.memory_space<vmem>>, vector<128x256xf32>
    %15 = arith.truncf %14 : vector<128x256xf32> to vector<128x256xbf16>
    %c0_13 = arith.constant 0 : index
    %c0_14 = arith.constant 0 : index
    %c0_15 = arith.constant 0 : index
    %16 = vector.load %arg4[%c0_13, %c0_14, %c0_15] : memref<3x256x512xbf16, #tpu.memory_space<vmem>>, vector<1x256x512xbf16>
    %17 = vector.shape_cast %16 : vector<1x256x512xbf16> to vector<256x512xbf16>
    %cst_16 = arith.constant dense<0.000000e+00> : vector<128x512xf32>
    %18 = tpu.matmul %15, %17, %cst_16 {dimension_numbers = #tpu.dot_dimension_numbers<[1], [0], [0], [1], [0, 0, 1, 1], [], []>} : vector<128x256xbf16>, vector<256x512xbf16>, vector<128x512xf32> -> vector<128x512xf32>
    %c16_17 = arith.constant 16 : index
    %c0_18 = arith.constant 0 : index
    %19 = vector.load %arg6[%c16_17, %c0_18] : memref<160x256xf32, #tpu.memory_space<vmem>>, vector<128x256xf32>
    %20 = arith.truncf %19 : vector<128x256xf32> to vector<128x256xbf16>
    %c1 = arith.constant 1 : index
    %c0_19 = arith.constant 0 : index
    %c0_20 = arith.constant 0 : index
    %21 = vector.load %arg4[%c1, %c0_19, %c0_20] : memref<3x256x512xbf16, #tpu.memory_space<vmem>>, vector<1x256x512xbf16>
    %22 = vector.shape_cast %21 : vector<1x256x512xbf16> to vector<256x512xbf16>
    %cst_21 = arith.constant dense<0.000000e+00> : vector<128x512xf32>
    %23 = tpu.matmul %20, %22, %cst_21 {dimension_numbers = #tpu.dot_dimension_numbers<[1], [0], [0], [1], [0, 0, 1, 1], [], []>} : vector<128x256xbf16>, vector<256x512xbf16>, vector<128x512xf32> -> vector<128x512xf32>
    %24 = arith.addf %18, %23 : vector<128x512xf32>
    %c32 = arith.constant 32 : index
    %c0_22 = arith.constant 0 : index
    %25 = vector.load %arg6[%c32, %c0_22] : memref<160x256xf32, #tpu.memory_space<vmem>>, vector<128x256xf32>
    %26 = arith.truncf %25 : vector<128x256xf32> to vector<128x256xbf16>
    %c2 = arith.constant 2 : index
    %c0_23 = arith.constant 0 : index
    %c0_24 = arith.constant 0 : index
    %27 = vector.load %arg4[%c2, %c0_23, %c0_24] : memref<3x256x512xbf16, #tpu.memory_space<vmem>>, vector<1x256x512xbf16>
    %28 = vector.shape_cast %27 : vector<1x256x512xbf16> to vector<256x512xbf16>
    %cst_25 = arith.constant dense<0.000000e+00> : vector<128x512xf32>
    %29 = tpu.matmul %26, %28, %cst_25 {dimension_numbers = #tpu.dot_dimension_numbers<[1], [0], [0], [1], [0, 0, 1, 1], [], []>} : vector<128x256xbf16>, vector<256x512xbf16>, vector<128x512xf32> -> vector<128x512xf32>
    %30 = arith.addf %24, %29 : vector<128x512xf32>
    %c0_26 = arith.constant 0 : index
    %c0_27 = arith.constant 0 : index
    %c0_28 = arith.constant 0 : index
    %31 = vector.load %arg5[%c0_26, %c0_27, %c0_28] : memref<1x128x768xf32, #tpu.memory_space<vmem>>, vector<1x128x256xf32>
    %32 = vector.shape_cast %31 : vector<1x128x256xf32> to vector<128x256xf32>
    %33 = vector.shape_cast %4 : vector<128x256xf32> to vector<1x128x256xf32>
    tpu.vector_store %arg5[%c0_26, %c0_27, %c0_28], %33 {strides = array<i32>} : memref<1x128x768xf32, #tpu.memory_space<vmem>>, vector<1x128x256xf32>,
    %c0_29 = arith.constant 0 : index
    %c0_30 = arith.constant 0 : index
    %c256 = arith.constant 256 : index
    %34 = vector.load %arg5[%c0_29, %c0_30, %c256] : memref<1x128x768xf32, #tpu.memory_space<vmem>>, vector<1x128x512xf32>
    %35 = vector.shape_cast %34 : vector<1x128x512xf32> to vector<128x512xf32>
    %36 = vector.shape_cast %30 : vector<128x512xf32> to vector<1x128x512xf32>
    tpu.vector_store %arg5[%c0_29, %c0_30, %c256], %36 {strides = array<i32>} : memref<1x128x768xf32, #tpu.memory_space<vmem>>, vector<1x128x512xf32>,
    return
  }
  func.func @transform_0(%arg0: i32) -> (i32, i32, i32) {
    %c0_i32 = arith.constant 0 : i32
    %c0_i32_0 = arith.constant 0 : i32
    %c0_i32_1 = arith.constant 0 : i32
    return %arg0, %c0_i32, %c0_i32_0 : i32, i32, i32
  }
  func.func @transform_1(%arg0: i32) -> (i32, i32) {
    %c0_i32 = arith.constant 0 : i32
    %c0_i32_0 = arith.constant 0 : i32
    %c0_i32_1 = arith.constant 0 : i32
    return %c0_i32, %c0_i32_0 : i32, i32
  }
  func.func @transform_2(%arg0: i32) -> (i32, i32) {
    %c0_i32 = arith.constant 0 : i32
    %c0_i32_0 = arith.constant 0 : i32
    %c0_i32_1 = arith.constant 0 : i32
    return %c0_i32, %c0_i32_0 : i32, i32
  }
  func.func @transform_3(%arg0: i32) -> (i32, i32, i32) {
    %c0_i32 = arith.constant 0 : i32
    %c0_i32_0 = arith.constant 0 : i32
    %c0_i32_1 = arith.constant 0 : i32
    %c0_i32_2 = arith.constant 0 : i32
    return %c0_i32, %c0_i32_0, %c0_i32_1 : i32, i32, i32
  }
  func.func @transform_4(%arg0: i32) -> (i32, i32, i32) {
    %c0_i32 = arith.constant 0 : i32
    %c0_i32_0 = arith.constant 0 : i32
    %c0_i32_1 = arith.constant 0 : i32
    return %arg0, %c0_i32, %c0_i32_0 : i32, i32, i32
  }
}

</mosaic_0001>

<bundles_post_ra>
// kernel: classification_basic_block_apply.1
= control target key start
LH: loop header
LB: loop body
LE: loop exit
PB: predicated region body
PF: predicated region fallthrough
CT: control target
= control target key end

     0   :  { %v59_v37 = vlaneseq  ;;  %s4260_s3 = inlined_call_operand.vmem [shape: bf16[3,256,512], index: 3, kind: input, shape index: {}]   ;;  %s4261_s0 = inlined_call_operand.vmem [shape: f32[1,128,256], index: 0, kind: input, shape index: {}]   ;;  %s4262_s1 = inlined_call_operand.vmem [shape: f32[1,256], index: 1, kind: input, shape index: {}]   ;;  %s4263_s2 = inlined_call_operand.vmem [shape: f32[1,256], index: 2, kind: input, shape index: {}]   ;;  %s4264_s4 = inlined_call_operand.vmem [shape: f32[1,128,768], index: 4, kind: output, shape index: {}]  }
   0x1   :  { %v2756_v0 = vld [vmem:[%s4260_s3 + $0x204] ss:$16 sps:$4 sm:$0xff]   ;;  %v2758_v1 = vld [vmem:[%s4260_s3 + $0x20c] ss:$16 sps:$4 sm:$0xff]   ;;  %v2760_v2 = vld [vmem:[%s4260_s3 + $0x200] ss:$16 sps:$4 sm:$0xff]  }
   0x2   :  { %712 = vmatprep.subr.bf16.mxu0 %v2756_v0  ;;  %v2761_v3 = vld [vmem:[%s4260_s3 + $0x208] ss:$16 sps:$4 sm:$0xff]   ;;  %825 = vmatprep.subr.bf16.mxu1 %v2758_v1  ;;  %v2762_v4 = vld [vmem:[%s4260_s3 + $0x224] ss:$16 sps:$4 sm:$0xff]   ;;  %v2764_v5 = vld [vmem:[%s4260_s3 + $0x22c] ss:$16 sps:$4 sm:$0xff]  }
   0x3   :  { %713 = vmatpush1.bf16.msra.mxu0 %v2760_v2  ;;  %826 = vmatpush1.bf16.msra.mxu1 %v2761_v3  ;;  %v2766_v6 = vld [vmem:[%s4260_s3 + $0x220] ss:$16 sps:$4 sm:$0xff]   ;;  %v2767_v7 = vld [vmem:[%s4260_s3 + $0x228] ss:$16 sps:$4 sm:$0xff]   ;;  %v2768_v8 = vld [vmem:[%s4260_s3 + $0x244] ss:$16 sps:$4 sm:$0xff]  }
   0x4   :  { %714 = vmatprep.subr.bf16.mxu0 %v2762_v4  ;;  %827 = vmatprep.subr.bf16.mxu1 %v2764_v5  ;;  %v2770_v9 = vld [vmem:[%s4260_s3 + $0x24c] ss:$16 sps:$4 sm:$0xff]   ;;  %v2772_v10 = vld [vmem:[%s4260_s3 + $0x240] ss:$16 sps:$4 sm:$0xff]   ;;  %v2773_v11 = vld [vmem:[%s4260_s3 + $0x248] ss:$16 sps:$4 sm:$0xff]  }
   0x5   :  { %v2774_v12 = vld [vmem:[%s4260_s3 + $0x264] ss:$16 sps:$4 sm:$0xff]   ;;  %v2776_v13 = vld [vmem:[%s4260_s3 + $0x26c] ss:$16 sps:$4 sm:$0xff]   ;;  %v2778_v14 = vld [vmem:[%s4260_s3 + $0x260] ss:$16 sps:$4 sm:$0xff]  }
   0x6   :  { %v2779_v15 = vld [vmem:[%s4260_s3 + $0x268] ss:$16 sps:$4 sm:$0xff]   ;;  %v2780_v16 = vld [vmem:[%s4260_s3 + $0x284] ss:$16 sps:$4 sm:$0xff]   ;;  %v2782_v17 = vld [vmem:[%s4260_s3 + $0x28c] ss:$16 sps:$4 sm:$0xff]  }
   0x7   :  { %715 = vmatpush1.bf16.msra.mxu0 %v2766_v6  ;;  %828 = vmatpush1.bf16.msra.mxu1 %v2767_v7  ;;  %v2784_v18 = vld [vmem:[%s4260_s3 + $0x280] ss:$16 sps:$4 sm:$0xff]   ;;  %v2785_v19 = vld [vmem:[%s4260_s3 + $0x288] ss:$16 sps:$4 sm:$0xff]   ;;  %v2786_v20 = vld [vmem:[%s4260_s3 + $0x2a4] ss:$16 sps:$4 sm:$0xff]  }
   0x8   :  { %716 = vmatprep.subr.bf16.mxu0 %v2768_v8  ;;  %829 = vmatprep.subr.bf16.mxu1 %v2770_v9  ;;  %v2788_v21 = vld [vmem:[%s4260_s3 + $0x2ac] ss:$16 sps:$4 sm:$0xff]   ;;  %v2790_v22 = vld [vmem:[%s4260_s3 + $0x2a0] ss:$16 sps:$4 sm:$0xff]   ;;  %v2791_v23 = vld [vmem:[%s4260_s3 + $0x2a8] ss:$16 sps:$4 sm:$0xff]  }
   0x9   :  { %v2792_v24 = vld [vmem:[%s4260_s3 + $0x2c4] ss:$16 sps:$4 sm:$0xff]   ;;  %v2794_v25 = vld [vmem:[%s4260_s3 + $0x2cc] ss:$16 sps:$4 sm:$0xff]   ;;  %v2796_v26 = vld [vmem:[%s4260_s3 + $0x2c0] ss:$16 sps:$4 sm:$0xff]  }
   0xa   :  { %v2797_v27 = vld [vmem:[%s4260_s3 + $0x2c8] ss:$16 sps:$4 sm:$0xff]   ;;  %v2798_v28 = vld [vmem:[%s4260_s3 + $0x2e4] ss:$16 sps:$4 sm:$0xff]   ;;  %v2800_v29 = vld [vmem:[%s4260_s3 + $0x2ec] ss:$16 sps:$4 sm:$0xff]  }
   0xb   :  { %717 = vmatpush1.bf16.msra.mxu0 %v2772_v10  ;;  %830 = vmatpush1.bf16.msra.mxu1 %v2773_v11  ;;  %v2802_v30 = vld [vmem:[%s4260_s3 + $0x2e0] ss:$16 sps:$4 sm:$0xff]   ;;  %v2803_v31 = vld [vmem:[%s4260_s3 + $0x2e8] ss:$16 sps:$4 sm:$0xff]   ;;  %v2804_v32 = vld [vmem:[%s4260_s3 + $0x304] ss:$16 sps:$4 sm:$0xff]  }
   0xc   :  { %718 = vmatprep.subr.bf16.mxu0 %v2774_v12  ;;  %831 = vmatprep.subr.bf16.mxu1 %v2776_v13  ;;  %v2806_v33 = vld [vmem:[%s4260_s3 + $0x30c] ss:$16 sps:$4 sm:$0xff]   ;;  %v2808_v34 = vld [vmem:[%s4260_s3 + $0x300] ss:$16 sps:$4 sm:$0xff]   ;;  %v2809_v35 = vld [vmem:[%s4260_s3 + $0x308] ss:$16 sps:$4 sm:$0xff]  }
   0xd   :  { %v2810_v36 = vld [vmem:[%s4260_s3 + $0x324] ss:$16 sps:$4 sm:$0xff]   ;;  %v2812_v38 = vld [vmem:[%s4260_s3 + $0x32c] ss:$16 sps:$4 sm:$0xff]   ;;  %v2814_v39 = vld [vmem:[%s4260_s3 + $0x320] ss:$16 sps:$4 sm:$0xff]  }
   0xe   :  { %v2815_v40 = vld [vmem:[%s4260_s3 + $0x328] ss:$16 sps:$4 sm:$0xff]   ;;  %v2816_v41 = vld [vmem:[%s4260_s3 + $0x344] ss:$16 sps:$4 sm:$0xff]   ;;  %v60_v42 = vshrl.u32 %v59_v37, 7 }
   0xf   :  { %719 = vmatpush1.bf16.msra.mxu0 %v2778_v14  ;;  %832 = vmatpush1.bf16.msra.mxu1 %v2779_v15  ;;  %v2818_v43 = vld [vmem:[%s4260_s3 + $0x34c] ss:$16 sps:$4 sm:$0xff]   ;;  %v2820_v44 = vld [vmem:[%s4260_s3 + $0x340] ss:$16 sps:$4 sm:$0xff]   ;;  %v2821_v45 = vld [vmem:[%s4260_s3 + $0x348] ss:$16 sps:$4 sm:$0xff]  }
  0x10   :  { %720 = vmatprep.subr.bf16.mxu0 %v2780_v16  ;;  %833 = vmatprep.subr.bf16.mxu1 %v2782_v17  ;;  %v2822_v46 = vld [vmem:[%s4260_s3 + $0x364] ss:$16 sps:$4 sm:$0xff]   ;;  %v65_v47 = vsub.s32 1, %v60_v42  ;;  %v2824_v48 = vld [vmem:[%s4260_s3 + $0x36c] ss:$16 sps:$4 sm:$0xff]   ;;  %v61_v55 = vsub.s32 0, %v60_v42 }
  0x11   :  { %v2826_v49 = vld [vmem:[%s4260_s3 + $0x360] ss:$16 sps:$4 sm:$0xff]   ;;  %v2827_v50 = vld [vmem:[%s4260_s3 + $0x368] ss:$16 sps:$4 sm:$0xff]   ;;  %v2828_v60 = vld [vmem:[%s4260_s3 + $0x384] ss:$16 sps:$4 sm:$0xff]  }
  0x12   :  { %v26_v51 = vld [vmem:[%s4261_s0 + $0x8] sm:$0xff]  ;;  %v28_v52 = vld [vmem:[%s4261_s0 + $0x18] sm:$0xff]  ;;  %v57_v53 = vld [vmem:[%s4262_s1] sm:$0x3] }
  0x13   :  { %721 = vmatpush1.bf16.msra.mxu0 %v2784_v18  ;;  %834 = vmatpush1.bf16.msra.mxu1 %v2785_v19  ;;  %v101_v54 = vld [vmem:[%s4263_s2] sm:$0x3]  ;;  %2208 = vst [vmem:[%s4264_s4 + $0x8] sm:$0xff] %v26_v51  ;;  %v3229_v56 = vrot.slane %v57_v53, %v65_v47  ;;  %2210 = vst [vmem:[%s4264_s4 + $0x38] sm:$0xff] %v28_v52  ;;  %v27_v59 = vld [vmem:[%s4261_s0 + $0x10] sm:$0xff]  ;;  %v3256_v0 = vrot.slane %v57_v53, %v61_v55 }
  0x14   :  { %722 = vmatprep.subr.bf16.mxu0 %v2786_v20  ;;  %835 = vmatprep.subr.bf16.mxu1 %v2788_v21  ;;  %v3231_v57 = vrot.slane %v101_v54, %v65_v47  ;;  %v25_v58 = vld [vmem:[%s4261_s0] sm:$0xff]  ;;  %v2830_v61 = vld [vmem:[%s4260_s3 + $0x38c] ss:$16 sps:$4 sm:$0xff]   ;;  %2209 = vst [vmem:[%s4264_s4 + $0x30] sm:$0xff] %v27_v59  ;;  %v2833_v2 = vld [vmem:[%s4260_s3 + $0x388] ss:$16 sps:$4 sm:$0xff]   ;;  %v3283_v14 = vrot.slane %v101_v54, %v61_v55 }
  0x15   :  { %2207 = vst [vmem:[%s4264_s4] sm:$0xff] %v25_v58  ;;  %v70_v62 = vmul.f32 %v3229_v56, %v26_v51  ;;  %v72_v63 = vmul.f32 %v3229_v56, %v28_v52  ;;  %v2832_v1 = vld [vmem:[%s4260_s3 + $0x380] ss:$16 sps:$4 sm:$0xff]   ;;  %v2834_v5 = vld [vmem:[%s4260_s3 + $0x3a4] ss:$16 sps:$4 sm:$0xff]   ;;  %v2836_v6 = vld [vmem:[%s4260_s3 + $0x3ac] ss:$16 sps:$4 sm:$0xff]   ;;  %v69_v12 = vmul.f32 %v3256_v0, %v25_v58  ;;  %v71_v13 = vmul.f32 %v3256_v0, %v27_v59 }
  0x16   :  { %v30_v9 = vld [vmem:[%s4261_s0 + $0x28] sm:$0xff]  ;;  %v32_v10 = vld [vmem:[%s4261_s0 + $0x38] sm:$0xff]  ;;  %v29_v11 = vld [vmem:[%s4261_s0 + $0x20] sm:$0xff] }
  0x17   :  { %723 = vmatpush1.bf16.msra.mxu0 %v2790_v22  ;;  %836 = vmatpush1.bf16.msra.mxu1 %v2791_v23  ;;  %v114_v3 = vadd.f32 %v3231_v57, %v70_v62  ;;  %v116_v4 = vadd.f32 %v3231_v57, %v72_v63  ;;  %2212 = vst [vmem:[%s4264_s4 + $0x68] sm:$0xff] %v30_v9  ;;  %2214 = vst [vmem:[%s4264_s4 + $0x98] sm:$0xff] %v32_v10  ;;  %v31_v15 = vld [vmem:[%s4261_s0 + $0x30] sm:$0xff]  ;;  %v2839_v17 = vld [vmem:[%s4260_s3 + $0x3a8] ss:$16 sps:$4 sm:$0xff]  }
  0x18   :  { %724 = vmatprep.subr.bf16.mxu0 %v2792_v24  ;;  %837 = vmatprep.subr.bf16.mxu1 %v2794_v25  ;;  %2211 = vst [vmem:[%s4264_s4 + $0x60] sm:$0xff] %v29_v11  ;;  %v2838_v16 = vld [vmem:[%s4260_s3 + $0x3a0] ss:$16 sps:$4 sm:$0xff]   ;;  %2213 = vst [vmem:[%s4264_s4 + $0x90] sm:$0xff] %v31_v15  ;;  %v2840_v19 = vld [vmem:[%s4260_s3 + $0x3c4] ss:$16 sps:$4 sm:$0xff]   ;;  %v74_v21 = vmul.f32 %v3229_v56, %v30_v9  ;;  %v76_v22 = vmul.f32 %v3229_v56, %v32_v10 }
  0x19   :  { %v146_v7 = vmax.f32 %v114_v3, 0.0  ;;  %v148_v8 = vmax.f32 %v116_v4, 0.0  ;;  %v2842_v20 = vld [vmem:[%s4260_s3 + $0x3cc] ss:$16 sps:$4 sm:$0xff]   ;;  %v2844_v23 = vld [vmem:[%s4260_s3 + $0x3c0] ss:$16 sps:$4 sm:$0xff]   ;;  %v113_v24 = vadd.f32 %v3283_v14, %v69_v12  ;;  %v115_v25 = vadd.f32 %v3283_v14, %v71_v13 }
  0x1a   :  { %v2857_v42 = vld [vmem:[%s4260_s3 + $0xc] ss:$16 sps:$4 sm:$0xff]   ;;  %v37_v58 = vld [vmem:[%s4261_s0 + $0x60] sm:$0xff]  ;;  %v39_v59 = vld [vmem:[%s4261_s0 + $0x70] sm:$0xff] }
  0x1b   :  { %725 = vmatpush1.bf16.msra.mxu0 %v2796_v26  ;;  %838 = vmatpush1.bf16.msra.mxu1 %v2797_v27  ;;  %v3303_v18 = vpack.c.bf16 %v148_v8, %v146_v7  ;;  %v2845_v26 = vld [vmem:[%s4260_s3 + $0x3c8] ss:$16 sps:$4 sm:$0xff]   ;;  %v2846_v27 = vld [vmem:[%s4260_s3 + $0x3e4] ss:$16 sps:$4 sm:$0xff]   ;;  %v147_v37 = vmax.f32 %v115_v25, 0.0  ;;  %2219 = vst [vmem:[%s4264_s4 + $0x120] sm:$0xff] %v37_v58 }
  0x1c   :  { %726 = vmatprep.subr.bf16.mxu0 %v2798_v28  ;;  %839 = vmatprep.subr.bf16.mxu1 %v2800_v29  ;;  %v2848_v28 = vld [vmem:[%s4260_s3 + $0x3ec] ss:$16 sps:$4 sm:$0xff]   ;;  %2221 = vst [vmem:[%s4264_s4 + $0x150] sm:$0xff] %v39_v59  ;;  %v2864_v8 = vld [vmem:[%s4260_s3 + $0x40] ss:$16 sps:$4 sm:$0xff]  }
  0x1d   :  { %744 = vmatprep.mubr.bf16.mxu0 %v3303_v18  ;;  %857 = vmatprep.mubr.bf16.mxu1 %v3303_v18  ;;  %v34_v29 = vld [vmem:[%s4261_s0 + $0x48] sm:$0xff]  ;;  %v40_v55 = vld [vmem:[%s4261_s0 + $0x78] sm:$0xff] }
  0x1e   :  { %2216 = vst [vmem:[%s4264_s4 + $0xc8] sm:$0xff] %v34_v29  ;;  %v78_v47 = vmul.f32 %v3229_v56, %v34_v29  ;;  %v2863_v51 = vld [vmem:[%s4260_s3 + $0x2c] ss:$16 sps:$4 sm:$0xff]   ;;  %2222 = vst [vmem:[%s4264_s4 + $0x158] sm:$0xff] %v40_v55  ;;  %v2867_v9 = vld [vmem:[%s4260_s3 + $0x48] ss:$16 sps:$4 sm:$0xff]   ;;  %v84_v13 = vmul.f32 %v3229_v56, %v40_v55 }
  0x1f   :  { %727 = vmatpush1.bf16.msra.mxu0 %v2802_v30  ;;  %840 = vmatpush1.bf16.msra.mxu1 %v2803_v31  ;;  %v36_v30 = vld [vmem:[%s4261_s0 + $0x58] sm:$0xff]  ;;  %v33_v31 = vld [vmem:[%s4261_s0 + $0x40] sm:$0xff]  ;;  %v38_v54 = vld [vmem:[%s4261_s0 + $0x68] sm:$0xff] }
  0x20   :  { %728 = vmatprep.subr.bf16.mxu0 %v2804_v32  ;;  %841 = vmatprep.subr.bf16.mxu1 %v2806_v33  ;;  %v118_v32 = vadd.f32 %v3231_v57, %v74_v21  ;;  %v120_v33 = vadd.f32 %v3231_v57, %v76_v22  ;;  %2218 = vst [vmem:[%s4264_s4 + $0xf8] sm:$0xff] %v36_v30  ;;  %2215 = vst [vmem:[%s4264_s4 + $0xc0] sm:$0xff] %v33_v31  ;;  %v2869_v7 = vld [vmem:[%s4260_s3 + $0x4c] ss:$16 sps:$4 sm:$0xff]   ;;  %v3457_v21 = vld [vmem:[%s4261_s0 + $0x80] sm:$0xff] }
  0x21   :  { %2220 = vst [vmem:[%s4264_s4 + $0x128] sm:$0xff] %v38_v54  ;;  %v122_v62 = vadd.f32 %v3231_v57, %v78_v47  ;;  %v77_v4 = vmul.f32 %v3256_v0, %v33_v31  ;;  %v82_v12 = vmul.f32 %v3229_v56, %v38_v54  ;;  %v43_v22 = vld [vmem:[%s4261_s0 + $0x90] sm:$0xff]  ;;  %2223 = vst [vmem:[%s4264_s4 + $0x180] sm:$0xff] %v3457_v21 }
  0x22   :  { %2225 = vst [vmem:[%s4264_s4 + $0x1b0] sm:$0xff] %v43_v22  ;;  %v81_v31 = vmul.f32 %v3256_v0, %v37_v58  ;;  %v2876_v47 = vld [vmem:[%s4260_s3 + $0x80] ss:$16 sps:$4 sm:$0xff]   ;;  %v2885_v58 = vld [vmem:[%s4260_s3 + $0xa8] ss:$16 sps:$4 sm:$0xff]  }
  0x23   :  { %729 = vmatpush1.bf16.msra.mxu0 %v2808_v34  ;;  %842 = vmatpush1.bf16.msra.mxu1 %v2809_v35  ;;  %v35_v34 = vld [vmem:[%s4261_s0 + $0x50] sm:$0xff]  ;;  %v154_v10 = vmax.f32 %v122_v62, 0.0  ;;  %v85_v62 = vmul.f32 %v3256_v0, %v3457_v21 }
  0x24   :  { %730 = vmatprep.subr.bf16.mxu0 %v2810_v36  ;;  %843 = vmatprep.subr.bf16.mxu1 %v2812_v38  ;;  %v2850_v35 = vld [vmem:[%s4260_s3 + $0x3e0] ss:$16 sps:$4 sm:$0xff]   ;;  %v145_v36 = vmax.f32 %v113_v24, 0.0  ;;  %v73_v38 = vmul.f32 %v3256_v0, %v29_v11  ;;  %2217 = vst [vmem:[%s4264_s4 + $0xf0] sm:$0xff] %v35_v34  ;;  %v2875_v24 = vld [vmem:[%s4260_s3 + $0x6c] ss:$16 sps:$4 sm:$0xff]  }
  0x26   :  { %v117_v52 = vadd.f32 %v3283_v14, %v73_v38 }
  0x27   :  { %731 = vmatpush1.bf16.msra.mxu0 %v2814_v39  ;;  %844 = vmatpush1.bf16.msra.mxu1 %v2815_v40  ;;  %v75_v39 = vmul.f32 %v3256_v0, %v31_v15  ;;  %v2851_v40 = vld [vmem:[%s4260_s3 + $0x3e8] ss:$16 sps:$4 sm:$0xff]  }
  0x28   :  { %732 = vmatprep.subr.bf16.mxu0 %v2816_v41  ;;  %845 = vmatprep.subr.bf16.mxu1 %v2818_v43  ;;  %v2854_v41 = vld [vmem:[%s4260_s3 + $0x4] ss:$16 sps:$4 sm:$0xff]   ;;  %v2852_v43 = vld [vmem:[%s4260_s3] ss:$16 sps:$4 sm:$0xff]  }
  0x29   :  { %v119_v53 = vadd.f32 %v3283_v14, %v75_v39 }
  0x2b   :  { %733 = vmatpush1.bf16.msra.mxu0 %v2820_v44  ;;  %846 = vmatpush1.bf16.msra.mxu1 %v2821_v45  ;;  %v2855_v44 = vld [vmem:[%s4260_s3 + $0x8] ss:$16 sps:$4 sm:$0xff]   ;;  %v150_v45 = vmax.f32 %v118_v32, 0.0  ;;  %v151_v3 = vmax.f32 %v119_v53, 0.0  ;;  %v83_v32 = vmul.f32 %v3256_v0, %v39_v59 }
  0x2c   :  { %734 = vmatprep.subr.bf16.mxu0 %v2822_v46  ;;  %847 = vmatprep.subr.bf16.mxu1 %v2824_v48  ;;  %v152_v46 = vmax.f32 %v120_v33, 0.0  ;;  %v80_v48 = vmul.f32 %v3229_v56, %v36_v30  ;;  %v2873_v33 = vld [vmem:[%s4260_s3 + $0x68] ss:$16 sps:$4 sm:$0xff]  }
  0x2e   :  { %v124_v63 = vadd.f32 %v3231_v57, %v80_v48  ;;  %v2879_v48 = vld [vmem:[%s4260_s3 + $0x88] ss:$16 sps:$4 sm:$0xff]  }
  0x2f   :  { %735 = vmatpush1.bf16.msra.mxu0 %v2826_v49  ;;  %848 = vmatpush1.bf16.msra.mxu1 %v2827_v50  ;;  %v3380_v49 = vpack.c.bf16 %v147_v37, %v145_v36  ;;  %v2860_v50 = vld [vmem:[%s4260_s3 + $0x24] ss:$16 sps:$4 sm:$0xff]  }
  0x30   :  { %736 = vmatprep.subr.bf16.mxu0 %v2828_v60  ;;  %849 = vmatprep.subr.bf16.mxu1 %v2830_v61  ;;  %v2858_v60 = vld [vmem:[%s4260_s3 + $0x20] ss:$16 sps:$4 sm:$0xff]   ;;  %v3414_v61 = vpack.c.bf16 %v152_v46, %v150_v45  ;;  %v156_v11 = vmax.f32 %v124_v63, 0.0  ;;  %v127_v45 = vadd.f32 %v3283_v14, %v83_v32  ;;  %v87_v63 = vmul.f32 %v3256_v0, %v43_v22 }
  0x31   :  { %v3527_v46 = vld [vmem:[%s4261_s0 + $0xb0] sm:$0xff] }
  0x32   :  { %v3481_v25 = vpack.c.bf16 %v156_v11, %v154_v10  ;;  %2229 = vst [vmem:[%s4264_s4 + $0x210] sm:$0xff] %v3527_v46  ;;  %v3593_v10 = vld [vmem:[%s4261_s0 + $0xd0] sm:$0xff]  ;;  %v91_v32 = vmul.f32 %v3256_v0, %v3527_v46 }
  0x33   :  { %737 = vmatpush1.bf16.msra.mxu0 %v2832_v1  ;;  %850 = vmatpush1.bf16.msra.mxu1 %v2833_v2  ;;  %v2861_v1 = vld [vmem:[%s4260_s3 + $0x28] ss:$16 sps:$4 sm:$0xff]   ;;  %v149_v2 = vmax.f32 %v117_v52, 0.0  ;;  %v2882_v52 = vld [vmem:[%s4260_s3 + $0xa0] ss:$16 sps:$4 sm:$0xff]   ;;  %2233 = vst [vmem:[%s4264_s4 + $0x270] sm:$0xff] %v3593_v10 }
  0x34   :  { %738 = vmatprep.subr.bf16.mxu0 %v2834_v5  ;;  %851 = vmatprep.subr.bf16.mxu1 %v2836_v6  ;;  %v79_v5 = vmul.f32 %v3256_v0, %v35_v34  ;;  %v2866_v6 = vld [vmem:[%s4260_s3 + $0x44] ss:$16 sps:$4 sm:$0xff]   ;;  %v2894_v22 = vld [vmem:[%s4260_s3 + $0xe0] ss:$16 sps:$4 sm:$0xff]  }
  0x35   :  { %v3444_v15 = vpack.c.bf16 %v151_v3, %v149_v2  ;;  %v2878_v34 = vld [vmem:[%s4260_s3 + $0x84] ss:$16 sps:$4 sm:$0xff]   ;;  %v2893_v2 = vld [vmem:[%s4260_s3 + $0xcc] ss:$16 sps:$4 sm:$0xff]   ;;  %v2900_v46 = vld [vmem:[%s4260_s3 + $0x100] ss:$16 sps:$4 sm:$0xff]  }
  0x36   :  { %v50_v3 = vld [vmem:[%s4261_s0 + $0xc8] sm:$0xff] }
  0x37   :  { %739 = vmatpush1.bf16.msra.mxu0 %v2838_v16  ;;  %852 = vmatpush1.bf16.msra.mxu1 %v2839_v17  ;;  %v121_v16 = vadd.f32 %v3283_v14, %v77_v4  ;;  %v123_v17 = vadd.f32 %v3283_v14, %v79_v5  ;;  %v52_v4 = vld [vmem:[%s4261_s0 + $0xd8] sm:$0xff]  ;;  %v3578_v5 = vld [vmem:[%s4261_s0 + $0xc0] sm:$0xff]  ;;  %2232 = vst [vmem:[%s4264_s4 + $0x248] sm:$0xff] %v50_v3 }
  0x38   :  { %740 = vmatprep.subr.bf16.mxu0 %v2840_v19  ;;  %853 = vmatprep.subr.bf16.mxu1 %v2842_v20  ;;  %v42_v19 = vld [vmem:[%s4261_s0 + $0x88] sm:$0xff]  ;;  %v44_v20 = vld [vmem:[%s4261_s0 + $0x98] sm:$0xff]  ;;  %2234 = vst [vmem:[%s4264_s4 + $0x278] sm:$0xff] %v52_v4  ;;  %2231 = vst [vmem:[%s4264_s4 + $0x240] sm:$0xff] %v3578_v5 }
  0x39   :  { %2224 = vst [vmem:[%s4264_s4 + $0x188] sm:$0xff] %v42_v19  ;;  %2226 = vst [vmem:[%s4264_s4 + $0x1b8] sm:$0xff] %v44_v20  ;;  %v153_v29 = vmax.f32 %v121_v16, 0.0  ;;  %v155_v30 = vmax.f32 %v123_v17, 0.0  ;;  %v86_v38 = vmul.f32 %v3229_v56, %v42_v19  ;;  %v88_v39 = vmul.f32 %v3229_v56, %v44_v20  ;;  %v2891_v17 = vld [vmem:[%s4260_s3 + $0xc8] ss:$16 sps:$4 sm:$0xff]  }
  0x3a   :  { %v131_v16 = vadd.f32 %v3283_v14, %v87_v63  ;;  %v2896_v19 = vld [vmem:[%s4260_s3 + $0xe4] ss:$16 sps:$4 sm:$0xff]   ;;  %v2899_v20 = vld [vmem:[%s4260_s3 + $0xec] ss:$16 sps:$4 sm:$0xff]   ;;  %v2906_v63 = vld [vmem:[%s4260_s3 + $0x120] ss:$16 sps:$4 sm:$0xff]  }
  0x3b   :  { %741 = vmatpush1.bf16.msra.mxu0 %v2844_v23  ;;  %854 = vmatpush1.bf16.msra.mxu1 %v2845_v26  ;;  %v2872_v23 = vld [vmem:[%s4260_s3 + $0x64] ss:$16 sps:$4 sm:$0xff]   ;;  %v126_v26 = vadd.f32 %v3231_v57, %v82_v12  ;;  %v130_v54 = vadd.f32 %v3231_v57, %v86_v38  ;;  %v132_v55 = vadd.f32 %v3231_v57, %v88_v39  ;;  %v2888_v12 = vld [vmem:[%s4260_s3 + $0xc0] ss:$16 sps:$4 sm:$0xff]  }
  0x3c   :  { %742 = vmatprep.subr.bf16.mxu0 %v2846_v27  ;;  %855 = vmatprep.subr.bf16.mxu1 %v2848_v28  ;;  %v128_v27 = vadd.f32 %v3231_v57, %v84_v13  ;;  %v2870_v28 = vld [vmem:[%s4260_s3 + $0x60] ss:$16 sps:$4 sm:$0xff]   ;;  %v129_v13 = vadd.f32 %v3283_v14, %v85_v62 }
  0x3d   :  { %v158_v36 = vmax.f32 %v126_v26, 0.0  ;;  %v3663_v39 = vld [vmem:[%s4261_s0 + $0xf0] sm:$0xff] }
  0x3e   :  { %v160_v37 = vmax.f32 %v128_v27, 0.0  ;;  %2237 = vst [vmem:[%s4264_s4 + $0x2d0] sm:$0xff] %v3663_v39 }
  0x3f   :  { %743 = vmatpush1.bf16.msra.mxu0 %v2850_v35  ;;  %856 = vmatpush1.bf16.msra.mxu1 %v2851_v40  ;;  %v2881_v35 = vld [vmem:[%s4260_s3 + $0x8c] ss:$16 sps:$4 sm:$0xff]  }
  0x40   :  { %1258 = vmatprep.subr.bf16.mxu0 %v2854_v41  ;;  %1371 = vmatprep.subr.bf16.mxu1 %v2857_v42  ;;  %v46_v40 = vld [vmem:[%s4261_s0 + $0xa8] sm:$0xff]  ;;  %v48_v41 = vld [vmem:[%s4261_s0 + $0xb8] sm:$0xff]  ;;  %v45_v42 = vld [vmem:[%s4261_s0 + $0xa0] sm:$0xff]  ;;  %v3551_v53 = vpack.c.bf16 %v160_v37, %v158_v36 }
  0x41   :  { %2228 = vst [vmem:[%s4264_s4 + $0x1e8] sm:$0xff] %v46_v40  ;;  %2230 = vst [vmem:[%s4264_s4 + $0x218] sm:$0xff] %v48_v41  ;;  %v89_v21 = vmul.f32 %v3256_v0, %v45_v42 }
  0x42   :  { %745 = vmatmul.mubr.bf16.vlgmr.msra.gmra.mrb[0].mxu0 %v3380_v49  ;;  %858 = vmatmul.mubr.bf16.vlgmr.msra.gmra.mrb[0].mxu1 %v3380_v49  ;;  %2227 = vst [vmem:[%s4264_s4 + $0x1e0] sm:$0xff] %v45_v42  ;;  %v94_v42 = vmul.f32 %v3229_v56, %v50_v3  ;;  %v95_v3 = vmul.f32 %v3256_v0, %v3593_v10  ;;  %v2912_v10 = vld [vmem:[%s4260_s3 + $0x140] ss:$16 sps:$4 sm:$0xff]  }
  0x43   :  { %1259 = vmatpush1.bf16.msra.mxu0 %v2852_v43  ;;  %1372 = vmatpush1.bf16.msra.mxu1 %v2855_v44  ;;  %v3514_v43 = vpack.c.bf16 %v155_v30, %v153_v29  ;;  %v125_v44 = vadd.f32 %v3283_v14, %v81_v31  ;;  %v163_v29 = vmax.f32 %v131_v16, 0.0  ;;  %v2902_v30 = vld [vmem:[%s4260_s3 + $0x104] ss:$16 sps:$4 sm:$0xff]   ;;  %v2905_v31 = vld [vmem:[%s4260_s3 + $0x10c] ss:$16 sps:$4 sm:$0xff]   ;;  %v133_v36 = vadd.f32 %v3283_v14, %v89_v21 }
  0x44   :  { %1260 = vmatprep.subr.bf16.mxu0 %v2860_v50  ;;  %1373 = vmatprep.subr.bf16.mxu1 %v2863_v51  ;;  %v2884_v50 = vld [vmem:[%s4260_s3 + $0xa4] ss:$16 sps:$4 sm:$0xff]   ;;  %v2887_v51 = vld [vmem:[%s4260_s3 + $0xac] ss:$16 sps:$4 sm:$0xff]   ;;  %v2915_v16 = vld [vmem:[%s4260_s3 + $0x148] ss:$16 sps:$4 sm:$0xff]  }
  0x45   :  { %754 = vmatprep.mubr.bf16.mxu0 %v3414_v61  ;;  %867 = vmatprep.mubr.bf16.mxu1 %v3414_v61  ;;  %v157_v59 = vmax.f32 %v125_v44, 0.0  ;;  %v96_v44 = vmul.f32 %v3229_v56, %v52_v4  ;;  %v2918_v21 = vld [vmem:[%s4260_s3 + $0x160] ss:$16 sps:$4 sm:$0xff]  }
  0x47   :  { %1261 = vmatpush1.bf16.msra.mxu0 %v2858_v60  ;;  %1374 = vmatpush1.bf16.msra.mxu1 %v2861_v1  ;;  %v159_v60 = vmax.f32 %v127_v45, 0.0  ;;  %v2890_v1 = vld [vmem:[%s4260_s3 + $0xc4] ss:$16 sps:$4 sm:$0xff]   ;;  %v140_v62 = vadd.f32 %v3231_v57, %v96_v44  ;;  %v2936_v44 = vld [vmem:[%s4260_s3 + $0x1c0] ss:$16 sps:$4 sm:$0xff]  }
  0x48   :  { %1262 = vmatprep.subr.bf16.mxu0 %v2866_v6  ;;  %1375 = vmatprep.subr.bf16.mxu1 %v2869_v7  ;;  %v162_v6 = vmax.f32 %v130_v54, 0.0  ;;  %v164_v7 = vmax.f32 %v132_v55, 0.0 }
  0x49   :  { %v3599_v11 = vpack.c.bf16 %v159_v60, %v157_v59  ;;  %v165_v59 = vmax.f32 %v133_v36, 0.0  ;;  %v138_v60 = vadd.f32 %v3231_v57, %v94_v42  ;;  %v2935_v36 = vld [vmem:[%s4260_s3 + $0x1ac] ss:$16 sps:$4 sm:$0xff]  }
  0x4a   :  { %755 = vmatmul.mubr.bf16.gmra.mrb[4].mxu0 %v3444_v15  ;;  %868 = vmatmul.mubr.bf16.gmra.mrb[4].mxu1 %v3444_v15 }
  0x4b   :  { %1263 = vmatpush1.bf16.msra.mxu0 %v2864_v8  ;;  %1376 = vmatpush1.bf16.msra.mxu1 %v2867_v9  ;;  %v90_v8 = vmul.f32 %v3229_v56, %v46_v40  ;;  %v92_v9 = vmul.f32 %v3229_v56, %v48_v41 }
  0x4c   :  { %1264 = vmatprep.subr.bf16.mxu0 %v2872_v23  ;;  %1377 = vmatprep.subr.bf16.mxu1 %v2875_v24  ;;  %v2897_v23 = vld [vmem:[%s4260_s3 + $0xe8] ss:$16 sps:$4 sm:$0xff]   ;;  %v3626_v24 = vpack.c.bf16 %v164_v7, %v162_v6  ;;  %v2914_v6 = vld [vmem:[%s4260_s3 + $0x144] ss:$16 sps:$4 sm:$0xff]   ;;  %v170_v7 = vmax.f32 %v138_v60, 0.0 }
  0x4d   :  { %764 = vmatprep.mubr.bf16.mxu0 %v3481_v25  ;;  %877 = vmatprep.mubr.bf16.mxu1 %v3481_v25  ;;  %v134_v26 = vadd.f32 %v3231_v57, %v90_v8  ;;  %v136_v27 = vadd.f32 %v3231_v57, %v92_v9  ;;  %v172_v8 = vmax.f32 %v140_v62, 0.0  ;;  %v2956_v60 = vld [vmem:[%s4260_s3 + $0x424] ss:$16 sps:$4 sm:$0xff]   ;;  %v2959_v62 = vld [vmem:[%s4260_s3 + $0x42c] ss:$16 sps:$4 sm:$0xff]  }
  0x4f   :  { %1265 = vmatpush1.bf16.msra.mxu0 %v2870_v28  ;;  %1378 = vmatpush1.bf16.msra.mxu1 %v2873_v33  ;;  %v161_v28 = vmax.f32 %v129_v13, 0.0  ;;  %v54_v33 = vld [vmem:[%s4261_s0 + $0xe8] sm:$0xff]  ;;  %v166_v40 = vmax.f32 %v134_v26, 0.0  ;;  %v168_v41 = vmax.f32 %v136_v27, 0.0  ;;  %v139_v13 = vadd.f32 %v3283_v14, %v95_v3 }
  0x50   :  { %1266 = vmatprep.subr.bf16.mxu0 %v2878_v34  ;;  %1379 = vmatprep.subr.bf16.mxu1 %v2881_v35  ;;  %v56_v34 = vld [vmem:[%s4261_s0 + $0xf8] sm:$0xff]  ;;  %v3649_v35 = vld [vmem:[%s4261_s0 + $0xe0] sm:$0xff]  ;;  %v98_v37 = vmul.f32 %v3229_v56, %v54_v33  ;;  %2236 = vst [vmem:[%s4264_s4 + $0x2a8] sm:$0xff] %v54_v33  ;;  %v99_v27 = vmul.f32 %v3256_v0, %v3663_v39 }
  0x51   :  { %v100_v38 = vmul.f32 %v3229_v56, %v56_v34  ;;  %2238 = vst [vmem:[%s4264_s4 + $0x2d8] sm:$0xff] %v56_v34  ;;  %2235 = vst [vmem:[%s4264_s4 + $0x2a0] sm:$0xff] %v3649_v35  ;;  %v3677_v45 = vpack.c.bf16 %v163_v29, %v161_v28  ;;  %v97_v26 = vmul.f32 %v3256_v0, %v3649_v35  ;;  %v2921_v28 = vld [vmem:[%s4260_s3 + $0x168] ss:$16 sps:$4 sm:$0xff]   ;;  %v2926_v29 = vld [vmem:[%s4260_s3 + $0x184] ss:$16 sps:$4 sm:$0xff]  }
  0x52   :  { %765 = vmatmul.mubr.bf16.gmra.mrb[8].mxu0 %v3514_v43  ;;  %878 = vmatmul.mubr.bf16.gmra.mrb[8].mxu1 %v3514_v43  ;;  %v143_v33 = vadd.f32 %v3283_v14, %v99_v27  ;;  %v2927_v34 = vld [vmem:[%s4260_s3 + $0x188] ss:$16 sps:$4 sm:$0xff]   ;;  %v2932_v35 = vld [vmem:[%s4260_s3 + $0x1a4] ss:$16 sps:$4 sm:$0xff]   ;;  %v2965_v3 = vld [vmem:[%s4260_s3 + $0x44c] ss:$16 sps:$4 sm:$0xff]  }
  0x53   :  { %1267 = vmatpush1.bf16.msra.mxu0 %v2876_v47  ;;  %1380 = vmatpush1.bf16.msra.mxu1 %v2879_v48  ;;  %v2903_v47 = vld [vmem:[%s4260_s3 + $0x108] ss:$16 sps:$4 sm:$0xff]   ;;  %v135_v48 = vadd.f32 %v3283_v14, %v91_v32  ;;  %v144_v56 = vadd.f32 %v3231_v57, %v100_v38  ;;  %v141_v32 = vadd.f32 %v3283_v14, %v97_v26  ;;  %v2984_v26 = vld [vmem:[%s4260_s3 + $0x4c0] ss:$16 sps:$4 sm:$0xff]  }
  0x54   :  { %1268 = vmatprep.subr.bf16.mxu0 %v2884_v50  ;;  %1381 = vmatprep.subr.bf16.mxu1 %v2887_v51  ;;  %v142_v50 = vadd.f32 %v3231_v57, %v98_v37  ;;  %v2908_v51 = vld [vmem:[%s4260_s3 + $0x124] ss:$16 sps:$4 sm:$0xff]   ;;  %v2909_v57 = vld [vmem:[%s4260_s3 + $0x128] ss:$16 sps:$4 sm:$0xff]   ;;  %v175_v38 = vmax.f32 %v143_v33, 0.0 }
  0x55   :  { %774 = vmatprep.mubr.bf16.mxu0 %v3551_v53  ;;  %887 = vmatprep.mubr.bf16.mxu1 %v3551_v53  ;;  %v176_v55 = vmax.f32 %v144_v56, 0.0  ;;  %v173_v37 = vmax.f32 %v141_v32, 0.0  ;;  %v2933_v39 = vld [vmem:[%s4260_s3 + $0x1a8] ss:$16 sps:$4 sm:$0xff]   ;;  %v2998_v32 = vld [vmem:[%s4260_s3 + $0x504] ss:$16 sps:$4 sm:$0xff]  }
  0x56   :  { %v174_v54 = vmax.f32 %v142_v50, 0.0  ;;  %v2942_v50 = vld [vmem:[%s4260_s3 + $0x1e0] ss:$16 sps:$4 sm:$0xff]   ;;  %v2945_v56 = vld [vmem:[%s4260_s3 + $0x1e8] ss:$16 sps:$4 sm:$0xff]  }
  0x57   :  { %1269 = vmatpush1.bf16.msra.mxu0 %v2882_v52  ;;  %1382 = vmatpush1.bf16.msra.mxu1 %v2885_v58  ;;  %v2911_v52 = vld [vmem:[%s4260_s3 + $0x12c] ss:$16 sps:$4 sm:$0xff]   ;;  %v3694_v58 = vpack.c.bf16 %v168_v41, %v166_v40  ;;  %v2938_v40 = vld [vmem:[%s4260_s3 + $0x1c4] ss:$16 sps:$4 sm:$0xff]   ;;  %v3790_v42 = vpack.c.bf16 %v175_v38, %v173_v37  ;;  %v2987_v27 = vld [vmem:[%s4260_s3 + $0x4c8] ss:$16 sps:$4 sm:$0xff]  }
  0x58   :  { %1270 = vmatprep.subr.bf16.mxu0 %v2890_v1  ;;  %1383 = vmatprep.subr.bf16.mxu1 %v2893_v2  ;;  %v167_v1 = vmax.f32 %v135_v48, 0.0  ;;  %v93_v2 = vmul.f32 %v3256_v0, %v3578_v5  ;;  %v3707_v4 = vpack.c.bf16 %v176_v55, %v174_v54  ;;  %v2917_v5 = vld [vmem:[%s4260_s3 + $0x14c] ss:$16 sps:$4 sm:$0xff]   ;;  %v3044_v54 = vmov 0.0|0.0   ;;  %v2948_v55 = vld [vmem:[%s4260_s3 + $0x400] ss:$16 sps:$4 sm:$0xff]  }
  0x59   :  { %v2941_v41 = vld [vmem:[%s4260_s3 + $0x1cc] ss:$16 sps:$4 sm:$0xff]   ;;  %v3002_v37 = vld [vmem:[%s4260_s3 + $0x520] ss:$16 sps:$4 sm:$0xff]   ;;  %v3005_v38 = vld [vmem:[%s4260_s3 + $0x528] ss:$16 sps:$4 sm:$0xff]  }
  0x5a   :  { %775 = vmatmul.mubr.bf16.gmra.mrb[12].mxu0 %v3599_v11  ;;  %888 = vmatmul.mubr.bf16.gmra.mrb[12].mxu1 %v3599_v11  ;;  %v3720_v9 = vpack.c.bf16 %v167_v1, %v165_v59  ;;  %v2947_v48 = vld [vmem:[%s4260_s3 + $0x1ec] ss:$16 sps:$4 sm:$0xff]   ;;  %v2951_v59 = vld [vmem:[%s4260_s3 + $0x408] ss:$16 sps:$4 sm:$0xff]  }
  0x5b   :  { %1271 = vmatpush1.bf16.msra.mxu0 %v2888_v12  ;;  %1384 = vmatpush1.bf16.msra.mxu1 %v2891_v17  ;;  %v137_v12 = vadd.f32 %v3283_v14, %v93_v2  ;;  %v2920_v17 = vld [vmem:[%s4260_s3 + $0x164] ss:$16 sps:$4 sm:$0xff]   ;;  %v2930_v14 = vld [vmem:[%s4260_s3 + $0x1a0] ss:$16 sps:$4 sm:$0xff]   ;;  %v2957_v1 = vld [vmem:[%s4260_s3 + $0x428] ss:$16 sps:$4 sm:$0xff]  }
  0x5c   :  { %1272 = vmatprep.subr.bf16.mxu0 %v2896_v19  ;;  %1385 = vmatprep.subr.bf16.mxu1 %v2899_v20  ;;  %v2923_v19 = vld [vmem:[%s4260_s3 + $0x16c] ss:$16 sps:$4 sm:$0xff]   ;;  %v3736_v20 = vpack.c.bf16 %v172_v8, %v170_v7  ;;  %v2962_v2 = vld [vmem:[%s4260_s3 + $0x444] ss:$16 sps:$4 sm:$0xff]   ;;  %v2966_v7 = vld [vmem:[%s4260_s3 + $0x460] ss:$16 sps:$4 sm:$0xff]  }
  0x5d   :  { %784 = vmatprep.mubr.bf16.mxu0 %v3626_v24  ;;  %897 = vmatprep.mubr.bf16.mxu1 %v3626_v24  ;;  %v2969_v8 = vld [vmem:[%s4260_s3 + $0x468] ss:$16 sps:$4 sm:$0xff]   ;;  %v3001_v33 = vld [vmem:[%s4260_s3 + $0x50c] ss:$16 sps:$4 sm:$0xff]  }
  0x5f   :  { %1273 = vmatpush1.bf16.msra.mxu0 %v2894_v22  ;;  %1386 = vmatpush1.bf16.msra.mxu1 %v2897_v23  ;;  %v169_v22 = vmax.f32 %v137_v12, 0.0  ;;  %v171_v23 = vmax.f32 %v139_v13, 0.0  ;;  %v2972_v12 = vld [vmem:[%s4260_s3 + $0x480] ss:$16 sps:$4 sm:$0xff]   ;;  %v2975_v13 = vld [vmem:[%s4260_s3 + $0x488] ss:$16 sps:$4 sm:$0xff]  }
  0x60   :  { %1274 = vmatprep.subr.bf16.mxu0 %v2902_v30  ;;  %1387 = vmatprep.subr.bf16.mxu1 %v2905_v31  ;;  %v2929_v30 = vld [vmem:[%s4260_s3 + $0x18c] ss:$16 sps:$4 sm:$0xff]   ;;  %v2924_v31 = vld [vmem:[%s4260_s3 + $0x180] ss:$16 sps:$4 sm:$0xff]  }
  0x61   :  { %v3758_v0 = vpack.c.bf16 %v171_v23, %v169_v22  ;;  %v2986_v22 = vld [vmem:[%s4260_s3 + $0x4c4] ss:$16 sps:$4 sm:$0xff]   ;;  %v2989_v23 = vld [vmem:[%s4260_s3 + $0x4cc] ss:$16 sps:$4 sm:$0xff]  }
  0x62   :  { %785 = vmatmul.mubr.bf16.gmra.mrb[16].mxu0 %v3677_v45  ;;  %898 = vmatmul.mubr.bf16.gmra.mrb[16].mxu1 %v3677_v45 }
  0x63   :  { %1275 = vmatpush1.bf16.msra.mxu0 %v2900_v46  ;;  %1388 = vmatpush1.bf16.msra.mxu1 %v2903_v47  ;;  %v2939_v46 = vld [vmem:[%s4260_s3 + $0x1c8] ss:$16 sps:$4 sm:$0xff]   ;;  %v2944_v47 = vld [vmem:[%s4260_s3 + $0x1e4] ss:$16 sps:$4 sm:$0xff]  }
  0x64   :  { %1276 = vmatprep.subr.bf16.mxu0 %v2908_v51  ;;  %1389 = vmatprep.subr.bf16.mxu1 %v2911_v52  ;;  %v2950_v51 = vld [vmem:[%s4260_s3 + $0x404] ss:$16 sps:$4 sm:$0xff]   ;;  %v2953_v52 = vld [vmem:[%s4260_s3 + $0x40c] ss:$16 sps:$4 sm:$0xff]  }
  0x65   :  { %794 = vmatprep.mubr.bf16.mxu0 %v3694_v58  ;;  %907 = vmatprep.mubr.bf16.mxu1 %v3694_v58 }
  0x67   :  { %1277 = vmatpush1.bf16.msra.mxu0 %v2906_v63  ;;  %1390 = vmatpush1.bf16.msra.mxu1 %v2909_v57  ;;  %v2954_v63 = vld [vmem:[%s4260_s3 + $0x420] ss:$16 sps:$4 sm:$0xff]  }
  0x68   :  { %1278 = vmatprep.subr.bf16.mxu0 %v2914_v6  ;;  %1391 = vmatprep.subr.bf16.mxu1 %v2917_v5  ;;  %v2960_v57 = vld [vmem:[%s4260_s3 + $0x440] ss:$16 sps:$4 sm:$0xff]   ;;  %v2963_v6 = vld [vmem:[%s4260_s3 + $0x448] ss:$16 sps:$4 sm:$0xff]   ;;  %v2968_v5 = vld [vmem:[%s4260_s3 + $0x464] ss:$16 sps:$4 sm:$0xff]  }
  0x6a   :  { %795 = vmatmul.mubr.bf16.gmra.mrb[20].mxu0 %v3720_v9  ;;  %908 = vmatmul.mubr.bf16.gmra.mrb[20].mxu1 %v3720_v9 }
  0x6b   :  { %1279 = vmatpush1.bf16.msra.mxu0 %v2912_v10  ;;  %1392 = vmatpush1.bf16.msra.mxu1 %v2915_v16  ;;  %v2974_v10 = vld [vmem:[%s4260_s3 + $0x484] ss:$16 sps:$4 sm:$0xff]  }
  0x6c   :  { %1280 = vmatprep.subr.bf16.mxu0 %v2920_v17  ;;  %1393 = vmatprep.subr.bf16.mxu1 %v2923_v19  ;;  %v2980_v16 = vld [vmem:[%s4260_s3 + $0x4a4] ss:$16 sps:$4 sm:$0xff]   ;;  %v2983_v17 = vld [vmem:[%s4260_s3 + $0x4ac] ss:$16 sps:$4 sm:$0xff]   ;;  %v2978_v19 = vld [vmem:[%s4260_s3 + $0x4a0] ss:$16 sps:$4 sm:$0xff]  }
  0x6d   :  { %804 = vmatprep.mubr.bf16.mxu0 %v3736_v20  ;;  %917 = vmatprep.mubr.bf16.mxu1 %v3736_v20 }
  0x6f   :  { %1281 = vmatpush1.bf16.msra.mxu0 %v2918_v21  ;;  %1394 = vmatpush1.bf16.msra.mxu1 %v2921_v28  ;;  %v2981_v21 = vld [vmem:[%s4260_s3 + $0x4a8] ss:$16 sps:$4 sm:$0xff]   ;;  %v2992_v28 = vld [vmem:[%s4260_s3 + $0x4e4] ss:$16 sps:$4 sm:$0xff]  }
  0x70   :  { %1282 = vmatprep.subr.bf16.mxu0 %v2926_v29  ;;  %1395 = vmatprep.subr.bf16.mxu1 %v2929_v30  ;;  %v2995_v29 = vld [vmem:[%s4260_s3 + $0x4ec] ss:$16 sps:$4 sm:$0xff]   ;;  %v2990_v30 = vld [vmem:[%s4260_s3 + $0x4e0] ss:$16 sps:$4 sm:$0xff]  }
  0x72   :  { %805 = vmatmul.mubr.bf16.gmra.mrb[24].mxu0 %v3758_v0  ;;  %918 = vmatmul.mubr.bf16.gmra.mrb[24].mxu1 %v3758_v0 }
  0x73   :  { %1283 = vmatpush1.bf16.msra.mxu0 %v2924_v31  ;;  %1396 = vmatpush1.bf16.msra.mxu1 %v2927_v34  ;;  %v2993_v31 = vld [vmem:[%s4260_s3 + $0x4e8] ss:$16 sps:$4 sm:$0xff]   ;;  %v2996_v34 = vld [vmem:[%s4260_s3 + $0x500] ss:$16 sps:$4 sm:$0xff]  }
  0x74   :  { %1284 = vmatprep.subr.bf16.mxu0 %v2932_v35  ;;  %1397 = vmatprep.subr.bf16.mxu1 %v2935_v36  ;;  %v2999_v35 = vld [vmem:[%s4260_s3 + $0x508] ss:$16 sps:$4 sm:$0xff]   ;;  %v3004_v36 = vld [vmem:[%s4260_s3 + $0x524] ss:$16 sps:$4 sm:$0xff]  }
  0x75   :  { %814 = vmatprep.mubr.bf16.mxu0 %v3707_v4  ;;  %927 = vmatprep.mubr.bf16.mxu1 %v3707_v4 }
  0x77   :  { %1285 = vmatpush1.bf16.msra.mxu0 %v2930_v14  ;;  %1398 = vmatpush1.bf16.msra.mxu1 %v2933_v39  ;;  %v3007_v14 = vld [vmem:[%s4260_s3 + $0x52c] ss:$16 sps:$4 sm:$0xff]   ;;  %v3010_v39 = vld [vmem:[%s4260_s3 + $0x544] ss:$16 sps:$4 sm:$0xff]  }
  0x78   :  { %1286 = vmatprep.subr.bf16.mxu0 %v2938_v40  ;;  %1399 = vmatprep.subr.bf16.mxu1 %v2941_v41  ;;  %v3013_v40 = vld [vmem:[%s4260_s3 + $0x54c] ss:$16 sps:$4 sm:$0xff]   ;;  %v3008_v41 = vld [vmem:[%s4260_s3 + $0x540] ss:$16 sps:$4 sm:$0xff]  }
  0x7a   :  { %815 = vmatmul.mubr.bf16.gmra.mrb[28].mxu0 %v3790_v42  ;;  %928 = vmatmul.mubr.bf16.gmra.mrb[28].mxu1 %v3790_v42 }
  0x7b   :  { %1287 = vmatpush1.bf16.msra.mxu0 %v2936_v44  ;;  %1400 = vmatpush1.bf16.msra.mxu1 %v2939_v46  ;;  %v3011_v44 = vld [vmem:[%s4260_s3 + $0x548] ss:$16 sps:$4 sm:$0xff]   ;;  %v3016_v46 = vld [vmem:[%s4260_s3 + $0x564] ss:$16 sps:$4 sm:$0xff]  }
  0x7c   :  { %1288 = vmatprep.subr.bf16.mxu0 %v2944_v47  ;;  %1401 = vmatprep.subr.bf16.mxu1 %v2947_v48  ;;  %v3019_v47 = vld [vmem:[%s4260_s3 + $0x56c] ss:$16 sps:$4 sm:$0xff]   ;;  %v3014_v48 = vld [vmem:[%s4260_s3 + $0x560] ss:$16 sps:$4 sm:$0xff]  }
  0x7d   :  { %1290 = vmatprep.mubr.bf16.mxu0 %v3044_v54  ;;  %1403 = vmatprep.mubr.bf16.mxu1 %v3044_v54 }
  0x7f   :  { %1289 = vmatpush1.bf16.msra.mxu0 %v2942_v50  ;;  %1402 = vmatpush1.bf16.msra.mxu1 %v2945_v56  ;;  %v3017_v50 = vld [vmem:[%s4260_s3 + $0x568] ss:$16 sps:$4 sm:$0xff]   ;;  %v3022_v56 = vld [vmem:[%s4260_s3 + $0x584] ss:$16 sps:$4 sm:$0xff]  }
  0x80   :  { %1917 = vmatprep.subr.bf16.mxu0 %v2950_v51  ;;  %2030 = vmatprep.subr.bf16.mxu1 %v2953_v52  ;;  %v3025_v51 = vld [vmem:[%s4260_s3 + $0x58c] ss:$16 sps:$4 sm:$0xff]   ;;  %v3020_v52 = vld [vmem:[%s4260_s3 + $0x580] ss:$16 sps:$4 sm:$0xff]  }
  0x82   :  { %1291 = vmatmul.mubr.bf16.vlgmr.msra.gmra.mrb[0].mxu0 %v3044_v54  ;;  %1404 = vmatmul.mubr.bf16.vlgmr.msra.gmra.mrb[0].mxu1 %v3044_v54 }
  0x83   :  { %1918 = vmatpush1.bf16.msra.mxu0 %v2948_v55  ;;  %2031 = vmatpush1.bf16.msra.mxu1 %v2951_v59  ;;  %v3023_v55 = vld [vmem:[%s4260_s3 + $0x588] ss:$16 sps:$4 sm:$0xff]   ;;  %v3028_v59 = vld [vmem:[%s4260_s3 + $0x5a4] ss:$16 sps:$4 sm:$0xff]  }
  0x84   :  { %1919 = vmatprep.subr.bf16.mxu0 %v2956_v60  ;;  %2032 = vmatprep.subr.bf16.mxu1 %v2959_v62  ;;  %v3031_v60 = vld [vmem:[%s4260_s3 + $0x5ac] ss:$16 sps:$4 sm:$0xff]   ;;  %v3026_v62 = vld [vmem:[%s4260_s3 + $0x5a0] ss:$16 sps:$4 sm:$0xff]  }
  0x85   :  { %1300 = vmatprep.mubr.bf16.mxu0 %v3303_v18  ;;  %1413 = vmatprep.mubr.bf16.mxu1 %v3303_v18  ;;  %v2971_v18 = vld [vmem:[%s4260_s3 + $0x46c] ss:$16 sps:$4 sm:$0xff]  }
  0x87   :  { %1920 = vmatpush1.bf16.msra.mxu0 %v2954_v63  ;;  %2033 = vmatpush1.bf16.msra.mxu1 %v2957_v1  ;;  %v3029_v63 = vld [vmem:[%s4260_s3 + $0x5a8] ss:$16 sps:$4 sm:$0xff]   ;;  %v3034_v1 = vld [vmem:[%s4260_s3 + $0x5c4] ss:$16 sps:$4 sm:$0xff]  }
  0x88   :  { %1921 = vmatprep.subr.bf16.mxu0 %v2962_v2  ;;  %2034 = vmatprep.subr.bf16.mxu1 %v2965_v3  ;;  %v3037_v2 = vld [vmem:[%s4260_s3 + $0x5cc] ss:$16 sps:$4 sm:$0xff]   ;;  %v3032_v3 = vld [vmem:[%s4260_s3 + $0x5c0] ss:$16 sps:$4 sm:$0xff]  }
  0x8a   :  { %1301 = vmatmul.mubr.bf16.gmra.mrb[4].mxu0 %v3380_v49  ;;  %1414 = vmatmul.mubr.bf16.gmra.mrb[4].mxu1 %v3380_v49  ;;  %v2977_v49 = vld [vmem:[%s4260_s3 + $0x48c] ss:$16 sps:$4 sm:$0xff]  }
  0x8b   :  { %1922 = vmatpush1.bf16.msra.mxu0 %v2960_v57  ;;  %2035 = vmatpush1.bf16.msra.mxu1 %v2963_v6  ;;  %v3035_v57 = vld [vmem:[%s4260_s3 + $0x5c8] ss:$16 sps:$4 sm:$0xff]   ;;  %v3040_v6 = vld [vmem:[%s4260_s3 + $0x5e4] ss:$16 sps:$4 sm:$0xff]  }
  0x8c   :  { %1923 = vmatprep.subr.bf16.mxu0 %v2968_v5  ;;  %2036 = vmatprep.subr.bf16.mxu1 %v2971_v18  ;;  %v3043_v5 = vld [vmem:[%s4260_s3 + $0x5ec] ss:$16 sps:$4 sm:$0xff]   ;;  %v3038_v18 = vld [vmem:[%s4260_s3 + $0x5e0] ss:$16 sps:$4 sm:$0xff]  }
  0x8d   :  { %1310 = vmatprep.mubr.bf16.mxu0 %v3414_v61  ;;  %1423 = vmatprep.mubr.bf16.mxu1 %v3414_v61 }
  0x8f   :  { %1924 = vmatpush1.bf16.msra.mxu0 %v2966_v7  ;;  %2037 = vmatpush1.bf16.msra.mxu1 %v2969_v8  ;;  %v3041_v7 = vld [vmem:[%s4260_s3 + $0x5e8] ss:$16 sps:$4 sm:$0xff]  }
  0x90   :  { %1925 = vmatprep.subr.bf16.mxu0 %v2974_v10  ;;  %2038 = vmatprep.subr.bf16.mxu1 %v2977_v49 }
  0x92   :  { %1311 = vmatmul.mubr.bf16.gmra.mrb[8].mxu0 %v3444_v15  ;;  %1424 = vmatmul.mubr.bf16.gmra.mrb[8].mxu1 %v3444_v15 }
  0x93   :  { %1926 = vmatpush1.bf16.msra.mxu0 %v2972_v12  ;;  %2039 = vmatpush1.bf16.msra.mxu1 %v2975_v13 }
  0x94   :  { %1927 = vmatprep.subr.bf16.mxu0 %v2980_v16  ;;  %2040 = vmatprep.subr.bf16.mxu1 %v2983_v17 }
  0x95   :  { %1320 = vmatprep.mubr.bf16.mxu0 %v3481_v25  ;;  %1433 = vmatprep.mubr.bf16.mxu1 %v3481_v25 }
  0x97   :  { %1928 = vmatpush1.bf16.msra.mxu0 %v2978_v19  ;;  %2041 = vmatpush1.bf16.msra.mxu1 %v2981_v21 }
  0x98   :  { %1929 = vmatprep.subr.bf16.mxu0 %v2986_v22  ;;  %2042 = vmatprep.subr.bf16.mxu1 %v2989_v23 }
  0x9a   :  { %1321 = vmatmul.mubr.bf16.gmra.mrb[12].mxu0 %v3514_v43  ;;  %1434 = vmatmul.mubr.bf16.gmra.mrb[12].mxu1 %v3514_v43 }
  0x9b   :  { %1930 = vmatpush1.bf16.msra.mxu0 %v2984_v26  ;;  %2043 = vmatpush1.bf16.msra.mxu1 %v2987_v27 }
  0x9c   :  { %1931 = vmatprep.subr.bf16.mxu0 %v2992_v28  ;;  %2044 = vmatprep.subr.bf16.mxu1 %v2995_v29 }
  0x9d   :  { %1330 = vmatprep.mubr.bf16.mxu0 %v3551_v53  ;;  %1443 = vmatprep.mubr.bf16.mxu1 %v3551_v53 }
  0x9f   :  { %1932 = vmatpush1.bf16.msra.mxu0 %v2990_v30  ;;  %2045 = vmatpush1.bf16.msra.mxu1 %v2993_v31 }
  0xa0   :  { %1933 = vmatprep.subr.bf16.mxu0 %v2998_v32  ;;  %2046 = vmatprep.subr.bf16.mxu1 %v3001_v33 }
  0xa2   :  { %1331 = vmatmul.mubr.bf16.gmra.mrb[16].mxu0 %v3599_v11  ;;  %1444 = vmatmul.mubr.bf16.gmra.mrb[16].mxu1 %v3599_v11 }
  0xa3   :  { %1934 = vmatpush1.bf16.msra.mxu0 %v2996_v34  ;;  %2047 = vmatpush1.bf16.msra.mxu1 %v2999_v35 }
  0xa4   :  { %1935 = vmatprep.subr.bf16.mxu0 %v3004_v36  ;;  %2048 = vmatprep.subr.bf16.mxu1 %v3007_v14 }
  0xa5   :  { %1340 = vmatprep.mubr.bf16.mxu0 %v3626_v24  ;;  %1453 = vmatprep.mubr.bf16.mxu1 %v3626_v24 }
  0xa7   :  { %1936 = vmatpush1.bf16.msra.mxu0 %v3002_v37  ;;  %2049 = vmatpush1.bf16.msra.mxu1 %v3005_v38 }
  0xa8   :  { %1937 = vmatprep.subr.bf16.mxu0 %v3010_v39  ;;  %2050 = vmatprep.subr.bf16.mxu1 %v3013_v40 }
  0xaa   :  { %1341 = vmatmul.mubr.bf16.gmra.mrb[20].mxu0 %v3677_v45  ;;  %1454 = vmatmul.mubr.bf16.gmra.mrb[20].mxu1 %v3677_v45 }
  0xab   :  { %1938 = vmatpush1.bf16.msra.mxu0 %v3008_v41  ;;  %2051 = vmatpush1.bf16.msra.mxu1 %v3011_v44 }
  0xac   :  { %1939 = vmatprep.subr.bf16.mxu0 %v3016_v46  ;;  %2052 = vmatprep.subr.bf16.mxu1 %v3019_v47 }
  0xad   :  { %1350 = vmatprep.mubr.bf16.mxu0 %v3694_v58  ;;  %1463 = vmatprep.mubr.bf16.mxu1 %v3694_v58 }
  0xaf   :  { %1940 = vmatpush1.bf16.msra.mxu0 %v3014_v48  ;;  %2053 = vmatpush1.bf16.msra.mxu1 %v3017_v50 }
  0xb0   :  { %1941 = vmatprep.subr.bf16.mxu0 %v3022_v56  ;;  %2054 = vmatprep.subr.bf16.mxu1 %v3025_v51 }
  0xb2   :  { %1351 = vmatmul.mubr.bf16.gmra.mrb[24].mxu0 %v3720_v9  ;;  %1464 = vmatmul.mubr.bf16.gmra.mrb[24].mxu1 %v3720_v9 }
  0xb3   :  { %1942 = vmatpush1.bf16.msra.mxu0 %v3020_v52  ;;  %2055 = vmatpush1.bf16.msra.mxu1 %v3023_v55 }
  0xb4   :  { %1943 = vmatprep.subr.bf16.mxu0 %v3028_v59  ;;  %2056 = vmatprep.subr.bf16.mxu1 %v3031_v60 }
  0xb5   :  { %1360 = vmatprep.mubr.bf16.mxu0 %v3736_v20  ;;  %1473 = vmatprep.mubr.bf16.mxu1 %v3736_v20 }
  0xb7   :  { %1944 = vmatpush1.bf16.msra.mxu0 %v3026_v62  ;;  %2057 = vmatpush1.bf16.msra.mxu1 %v3029_v63 }
  0xb8   :  { %1945 = vmatprep.subr.bf16.mxu0 %v3034_v1  ;;  %2058 = vmatprep.subr.bf16.mxu1 %v3037_v2 }
  0xba   :  { %1361 = vmatmul.mubr.bf16.gmra.mrb[28].mxu0 %v3758_v0  ;;  %1474 = vmatmul.mubr.bf16.gmra.mrb[28].mxu1 %v3758_v0 }
  0xbb   :  { %1946 = vmatpush1.bf16.msra.mxu0 %v3032_v3  ;;  %2059 = vmatpush1.bf16.msra.mxu1 %v3035_v57 }
  0xbc   :  { %1947 = vmatprep.subr.bf16.mxu0 %v3040_v6  ;;  %2060 = vmatprep.subr.bf16.mxu1 %v3043_v5 }
  0xbd   :  { %1949 = vmatprep.mubr.bf16.mxu0 %v3414_v61  ;;  %2062 = vmatprep.mubr.bf16.mxu1 %v3414_v61 }
  0xbf   :  { %1948 = vmatpush1.bf16.msra.mxu0 %v3038_v18  ;;  %2061 = vmatpush1.bf16.msra.mxu1 %v3041_v7 }
  0xc2   :  { %1950 = vmatmul.mubr.bf16.vlgmr.msra.gmra.mrb[0].mxu0 %v3444_v15  ;;  %2063 = vmatmul.mubr.bf16.vlgmr.msra.gmra.mrb[0].mxu1 %v3444_v15 }
  0xc3   :  { %1959 = vmatprep.mubr.bf16.mxu0 %v3481_v25  ;;  %2072 = vmatprep.mubr.bf16.mxu1 %v3481_v25 }
  0xca   :  { %1960 = vmatmul.mubr.bf16.gmra.mrb[4].mxu0 %v3514_v43  ;;  %2073 = vmatmul.mubr.bf16.gmra.mrb[4].mxu1 %v3514_v43 }
  0xcb   :  { %1969 = vmatprep.mubr.bf16.mxu0 %v3551_v53  ;;  %2082 = vmatprep.mubr.bf16.mxu1 %v3551_v53 }
  0xd2   :  { %1970 = vmatmul.mubr.bf16.gmra.mrb[8].mxu0 %v3599_v11  ;;  %2083 = vmatmul.mubr.bf16.gmra.mrb[8].mxu1 %v3599_v11 }
  0xd3   :  { %1979 = vmatprep.mubr.bf16.mxu0 %v3626_v24  ;;  %2092 = vmatprep.mubr.bf16.mxu1 %v3626_v24 }
  0xda   :  { %1980 = vmatmul.mubr.bf16.gmra.mrb[12].mxu0 %v3677_v45  ;;  %2093 = vmatmul.mubr.bf16.gmra.mrb[12].mxu1 %v3677_v45 }
  0xdb   :  { %1989 = vmatprep.mubr.bf16.mxu0 %v3694_v58  ;;  %2102 = vmatprep.mubr.bf16.mxu1 %v3694_v58 }
  0xe2   :  { %1990 = vmatmul.mubr.bf16.gmra.mrb[16].mxu0 %v3720_v9  ;;  %2103 = vmatmul.mubr.bf16.gmra.mrb[16].mxu1 %v3720_v9 }
  0xe3   :  { %1999 = vmatprep.mubr.bf16.mxu0 %v3736_v20  ;;  %2112 = vmatprep.mubr.bf16.mxu1 %v3736_v20 }
  0xea   :  { %2000 = vmatmul.mubr.bf16.gmra.mrb[20].mxu0 %v3758_v0  ;;  %2113 = vmatmul.mubr.bf16.gmra.mrb[20].mxu1 %v3758_v0 }
  0xeb   :  { %2009 = vmatprep.mubr.bf16.mxu0 %v3707_v4  ;;  %2122 = vmatprep.mubr.bf16.mxu1 %v3707_v4 }
  0xf2   :  { %2010 = vmatmul.mubr.bf16.gmra.mrb[24].mxu0 %v3790_v42  ;;  %2123 = vmatmul.mubr.bf16.gmra.mrb[24].mxu1 %v3790_v42 }
  0xf3   :  { %2019 = vmatprep.mubr.bf16.mxu0 %v3044_v54  ;;  %2132 = vmatprep.mubr.bf16.mxu1 %v3044_v54 }
  0xfa   :  { %2020 = vmatmul.mubr.bf16.gmra.mrb[28].mxu0 %v3044_v54  ;;  %2133 = vmatmul.mubr.bf16.gmra.mrb[28].mxu1 %v3044_v54 }
 0x195   :  { %v1951_v61 = vpop.f32.mrb[0].mxu0  ;;  %v2064_v15 = vpop.f32.mrb[0].mxu1 }
 0x196   :  { %2239 = vst [vmem:[%s4264_s4 + $0x10] sm:$0xff] %v1951_v61  ;;  %2241 = vst [vmem:[%s4264_s4 + $0x20] sm:$0xff] %v2064_v15  ;;  %v1953_v25 = vpop.f32.mrb[1].mxu0  ;;  %v2066_v43 = vpop.f32.mrb[1].mxu1 }
 0x197   :  { %2240 = vst [vmem:[%s4264_s4 + $0x18] sm:$0xff] %v1953_v25  ;;  %2242 = vst [vmem:[%s4264_s4 + $0x28] sm:$0xff] %v2066_v43  ;;  %v1955_v53 = vpop.f32.mrb[2].mxu0  ;;  %v2068_v11 = vpop.f32.mrb[2].mxu1 }
 0x198   :  { %2243 = vst [vmem:[%s4264_s4 + $0x40] sm:$0xff] %v1955_v53  ;;  %2245 = vst [vmem:[%s4264_s4 + $0x50] sm:$0xff] %v2068_v11  ;;  %v1957_v24 = vpop.f32.mrb[3].mxu0  ;;  %v2070_v45 = vpop.f32.mrb[3].mxu1 }
 0x199   :  { %2244 = vst [vmem:[%s4264_s4 + $0x48] sm:$0xff] %v1957_v24  ;;  %2246 = vst [vmem:[%s4264_s4 + $0x58] sm:$0xff] %v2070_v45 }
 0x19d   :  { %v1961_v58 = vpop.f32.mrb[4].mxu0  ;;  %v2074_v4 = vpop.f32.mrb[4].mxu1 }
 0x19e   :  { %2247 = vst [vmem:[%s4264_s4 + $0x70] sm:$0xff] %v1961_v58  ;;  %2249 = vst [vmem:[%s4264_s4 + $0x80] sm:$0xff] %v2074_v4  ;;  %v1963_v9 = vpop.f32.mrb[5].mxu0  ;;  %v2076_v20 = vpop.f32.mrb[5].mxu1 }
 0x19f   :  { %2248 = vst [vmem:[%s4264_s4 + $0x78] sm:$0xff] %v1963_v9  ;;  %2250 = vst [vmem:[%s4264_s4 + $0x88] sm:$0xff] %v2076_v20  ;;  %v1965_v0 = vpop.f32.mrb[6].mxu0  ;;  %v2078_v42 = vpop.f32.mrb[6].mxu1 }
 0x1a0   :  { %2251 = vst [vmem:[%s4264_s4 + $0xa0] sm:$0xff] %v1965_v0  ;;  %2253 = vst [vmem:[%s4264_s4 + $0xb0] sm:$0xff] %v2078_v42  ;;  %v1967_v54 = vpop.f32.mrb[7].mxu0  ;;  %v2080_v8 = vpop.f32.mrb[7].mxu1 }
 0x1a1   :  { %2252 = vst [vmem:[%s4264_s4 + $0xa8] sm:$0xff] %v1967_v54  ;;  %2254 = vst [vmem:[%s4264_s4 + $0xb8] sm:$0xff] %v2080_v8 }
 0x1a5   :  { %v1971_v10 = vpop.f32.mrb[8].mxu0  ;;  %v2084_v49 = vpop.f32.mrb[8].mxu1 }
 0x1a6   :  { %2255 = vst [vmem:[%s4264_s4 + $0xd0] sm:$0xff] %v1971_v10  ;;  %2257 = vst [vmem:[%s4264_s4 + $0xe0] sm:$0xff] %v2084_v49  ;;  %v1973_v12 = vpop.f32.mrb[9].mxu0  ;;  %v2086_v13 = vpop.f32.mrb[9].mxu1 }
 0x1a7   :  { %2256 = vst [vmem:[%s4264_s4 + $0xd8] sm:$0xff] %v1973_v12  ;;  %2258 = vst [vmem:[%s4264_s4 + $0xe8] sm:$0xff] %v2086_v13  ;;  %v1975_v16 = vpop.f32.mrb[10].mxu0  ;;  %v2088_v17 = vpop.f32.mrb[10].mxu1 }
 0x1a8   :  { %2259 = vst [vmem:[%s4264_s4 + $0x100] sm:$0xff] %v1975_v16  ;;  %2261 = vst [vmem:[%s4264_s4 + $0x110] sm:$0xff] %v2088_v17  ;;  %v1977_v19 = vpop.f32.mrb[11].mxu0  ;;  %v2090_v21 = vpop.f32.mrb[11].mxu1 }
 0x1a9   :  { %2260 = vst [vmem:[%s4264_s4 + $0x108] sm:$0xff] %v1977_v19  ;;  %2262 = vst [vmem:[%s4264_s4 + $0x118] sm:$0xff] %v2090_v21 }
 0x1ad   :  { %v1981_v22 = vpop.f32.mrb[12].mxu0  ;;  %v2094_v23 = vpop.f32.mrb[12].mxu1 }
 0x1ae   :  { %2263 = vst [vmem:[%s4264_s4 + $0x130] sm:$0xff] %v1981_v22  ;;  %2265 = vst [vmem:[%s4264_s4 + $0x140] sm:$0xff] %v2094_v23  ;;  %v1983_v26 = vpop.f32.mrb[13].mxu0  ;;  %v2096_v27 = vpop.f32.mrb[13].mxu1 }
 0x1af   :  { %2264 = vst [vmem:[%s4264_s4 + $0x138] sm:$0xff] %v1983_v26  ;;  %2266 = vst [vmem:[%s4264_s4 + $0x148] sm:$0xff] %v2096_v27  ;;  %v1985_v28 = vpop.f32.mrb[14].mxu0  ;;  %v2098_v29 = vpop.f32.mrb[14].mxu1 }
 0x1b0   :  { %2267 = vst [vmem:[%s4264_s4 + $0x160] sm:$0xff] %v1985_v28  ;;  %2269 = vst [vmem:[%s4264_s4 + $0x170] sm:$0xff] %v2098_v29  ;;  %v1987_v30 = vpop.f32.mrb[15].mxu0  ;;  %v2100_v31 = vpop.f32.mrb[15].mxu1 }
 0x1b1   :  { %2268 = vst [vmem:[%s4264_s4 + $0x168] sm:$0xff] %v1987_v30  ;;  %2270 = vst [vmem:[%s4264_s4 + $0x178] sm:$0xff] %v2100_v31 }
 0x1b5   :  { %v1991_v32 = vpop.f32.mrb[16].mxu0  ;;  %v2104_v33 = vpop.f32.mrb[16].mxu1 }
 0x1b6   :  { %2271 = vst [vmem:[%s4264_s4 + $0x190] sm:$0xff] %v1991_v32  ;;  %2273 = vst [vmem:[%s4264_s4 + $0x1a0] sm:$0xff] %v2104_v33  ;;  %v1993_v34 = vpop.f32.mrb[17].mxu0  ;;  %v2106_v35 = vpop.f32.mrb[17].mxu1 }
 0x1b7   :  { %2272 = vst [vmem:[%s4264_s4 + $0x198] sm:$0xff] %v1993_v34  ;;  %2274 = vst [vmem:[%s4264_s4 + $0x1a8] sm:$0xff] %v2106_v35  ;;  %v1995_v36 = vpop.f32.mrb[18].mxu0  ;;  %v2108_v14 = vpop.f32.mrb[18].mxu1 }
 0x1b8   :  { %2275 = vst [vmem:[%s4264_s4 + $0x1c0] sm:$0xff] %v1995_v36  ;;  %2277 = vst [vmem:[%s4264_s4 + $0x1d0] sm:$0xff] %v2108_v14  ;;  %v1997_v37 = vpop.f32.mrb[19].mxu0  ;;  %v2110_v38 = vpop.f32.mrb[19].mxu1 }
 0x1b9   :  { %2276 = vst [vmem:[%s4264_s4 + $0x1c8] sm:$0xff] %v1997_v37  ;;  %2278 = vst [vmem:[%s4264_s4 + $0x1d8] sm:$0xff] %v2110_v38 }
 0x1bd   :  { %v2001_v39 = vpop.f32.mrb[20].mxu0  ;;  %v2114_v40 = vpop.f32.mrb[20].mxu1 }
 0x1be   :  { %2279 = vst [vmem:[%s4264_s4 + $0x1f0] sm:$0xff] %v2001_v39  ;;  %2281 = vst [vmem:[%s4264_s4 + $0x200] sm:$0xff] %v2114_v40  ;;  %v2003_v41 = vpop.f32.mrb[21].mxu0  ;;  %v2116_v44 = vpop.f32.mrb[21].mxu1 }
 0x1bf   :  { %2280 = vst [vmem:[%s4264_s4 + $0x1f8] sm:$0xff] %v2003_v41  ;;  %2282 = vst [vmem:[%s4264_s4 + $0x208] sm:$0xff] %v2116_v44  ;;  %v2005_v46 = vpop.f32.mrb[22].mxu0  ;;  %v2118_v47 = vpop.f32.mrb[22].mxu1 }
 0x1c0   :  { %2283 = vst [vmem:[%s4264_s4 + $0x220] sm:$0xff] %v2005_v46  ;;  %2285 = vst [vmem:[%s4264_s4 + $0x230] sm:$0xff] %v2118_v47  ;;  %v2007_v48 = vpop.f32.mrb[23].mxu0  ;;  %v2120_v50 = vpop.f32.mrb[23].mxu1 }
 0x1c1   :  { %2284 = vst [vmem:[%s4264_s4 + $0x228] sm:$0xff] %v2007_v48  ;;  %2286 = vst [vmem:[%s4264_s4 + $0x238] sm:$0xff] %v2120_v50 }
 0x1c5   :  { %v2011_v56 = vpop.f32.mrb[24].mxu0  ;;  %v2124_v51 = vpop.f32.mrb[24].mxu1 }
 0x1c6   :  { %2287 = vst [vmem:[%s4264_s4 + $0x250] sm:$0xff] %v2011_v56  ;;  %2289 = vst [vmem:[%s4264_s4 + $0x260] sm:$0xff] %v2124_v51  ;;  %v2013_v52 = vpop.f32.mrb[25].mxu0  ;;  %v2126_v55 = vpop.f32.mrb[25].mxu1 }
 0x1c7   :  { %2288 = vst [vmem:[%s4264_s4 + $0x258] sm:$0xff] %v2013_v52  ;;  %2290 = vst [vmem:[%s4264_s4 + $0x268] sm:$0xff] %v2126_v55  ;;  %v2015_v59 = vpop.f32.mrb[26].mxu0  ;;  %v2128_v60 = vpop.f32.mrb[26].mxu1 }
 0x1c8   :  { %2291 = vst [vmem:[%s4264_s4 + $0x280] sm:$0xff] %v2015_v59  ;;  %2293 = vst [vmem:[%s4264_s4 + $0x290] sm:$0xff] %v2128_v60  ;;  %v2017_v62 = vpop.f32.mrb[27].mxu0  ;;  %v2130_v63 = vpop.f32.mrb[27].mxu1 }
 0x1c9   :  { %2292 = vst [vmem:[%s4264_s4 + $0x288] sm:$0xff] %v2017_v62  ;;  %2294 = vst [vmem:[%s4264_s4 + $0x298] sm:$0xff] %v2130_v63 }
 0x1cd   :  { %v2021_v1 = vpop.f32.mrb[28].mxu0  ;;  %v2134_v2 = vpop.f32.mrb[28].mxu1 }
 0x1ce   :  { %2295 = vst [vmem:[%s4264_s4 + $0x2b0] sm:$0xff] %v2021_v1  ;;  %2297 = vst [vmem:[%s4264_s4 + $0x2c0] sm:$0xff] %v2134_v2  ;;  %v2023_v3 = vpop.f32.mrb[29].mxu0  ;;  %v2136_v57 = vpop.f32.mrb[29].mxu1 }
 0x1cf   :  { %2296 = vst [vmem:[%s4264_s4 + $0x2b8] sm:$0xff] %v2023_v3  ;;  %2298 = vst [vmem:[%s4264_s4 + $0x2c8] sm:$0xff] %v2136_v57  ;;  %v2025_v6 = vpop.f32.mrb[30].mxu0  ;;  %v2138_v5 = vpop.f32.mrb[30].mxu1 }
 0x1d0   :  { %2299 = vst [vmem:[%s4264_s4 + $0x2e0] sm:$0xff] %v2025_v6  ;;  %2301 = vst [vmem:[%s4264_s4 + $0x2f0] sm:$0xff] %v2138_v5  ;;  %v2027_v18 = vpop.f32.mrb[31].mxu0  ;;  %v2140_v7 = vpop.f32.mrb[31].mxu1 }
 0x1d1   :  { %2300 = vst [vmem:[%s4264_s4 + $0x2e8] sm:$0xff] %v2027_v18  ;;  %2302 = vst [vmem:[%s4264_s4 + $0x2f8] sm:$0xff] %v2140_v7 }

</bundles_post_ra>
